<compile_context>
chip_gen: v7x
topology: tpu7x:2x2x1
jax: 0.10.0
libtpu: 0.0.40
codegen_flags: <defaults>
</compile_context>

<pallas_src>
import functools
import math

import jax
import jax.numpy as jnp
from jax.experimental import pallas as pl
from jax.experimental.pallas import tpu as pltpu

# MXU operand dtype (accumulation is always float32).  Keep float32 on the
# VPU-side math; only dot inputs are cast.
MATMUL_DTYPE = jnp.bfloat16


# ----------------------------- kernel helpers ------------------------------

def _layernorm(x, gamma, beta, eps=1e-6):
    # x: (rows, D) f32, gamma/beta: (1, D) f32
    mean = jnp.mean(x, axis=-1, keepdims=True)
    var = jnp.mean((x - mean) ** 2, axis=-1, keepdims=True)
    return (x - mean) * jax.lax.rsqrt(var + eps) * gamma + beta


# --------------------------- fused encoder kernel --------------------------

def encoder_kernel(x_ref, bias_ref,
                   wqkv_ref, bqkv_ref, wo_ref, bo_ref,
                   g1_ref, be1_ref,
                   w1_ref, c1_ref, w2_ref, c2_ref,
                   g2_ref, be2_ref,
                   gf_ref, bf_ref,
                   out_ref,
                   act_ref,
                   *, num_heads, batch, seq):
    l = pl.program_id(0)
    num_layers = pl.num_programs(0)

    H = num_heads
    B = batch
    S = seq
    D = act_ref.shape[-1]
    dh = D // H
    scale = 1.0 / math.sqrt(dh)

    # Load the input once; the residual stream lives in VMEM across layers.
    @pl.when(l == 0)
    def _():
        act_ref[...] = x_ref[...].astype(jnp.float32)

    x = act_ref[...]                  # (B*S, D) f32, resident across grid steps
    bias = bias_ref[...]              # (B, 1, S) additive mask bias, f32

    wqkv = wqkv_ref[0]                # (H, D, 3*dh)  bf16 (fused q|k|v per head)
    bqkv = bqkv_ref[0]                # (H, 1, 3*dh)  f32
    wo = wo_ref[0]                    # (H, dh, D)    bf16
    bo = bo_ref[0]                    # (1, D)        f32

    # ---- multi-head self-attention (heads batched on a leading axis) ------
    attn_rows = []
    for b in range(B):                # static Python loop; B is tiny
        xb = x[b * S:(b + 1) * S, :]                                   # (S, D)
        xh = jnp.broadcast_to(xb.astype(MATMUL_DTYPE)[None], (H, S, D))
        # Fused QKV projection, one batched dot over heads.
        qkv = jnp.einsum('hsd,hde->hse', xh, wqkv,
                         preferred_element_type=jnp.float32) + bqkv    # (H,S,3dh)
        q = qkv[:, :, 0:dh].astype(MATMUL_DTYPE)
        k = qkv[:, :, dh:2 * dh].astype(MATMUL_DTYPE)
        v = qkv[:, :, 2 * dh:3 * dh].astype(MATMUL_DTYPE)

        s = jnp.einsum('hqe,hke->hqk', q, k,
                       preferred_element_type=jnp.float32) * scale     # (H,S,S)
        s = s + bias[b:b + 1]                       # additive mask, bcast (1,1,S)
        # One softmax pass for all heads.
        s = s - jnp.max(s, axis=-1, keepdims=True)
        p = jnp.exp(s)
        p = p * pl.reciprocal(jnp.sum(p, axis=-1, keepdims=True), approx=True)

        ctx = jnp.einsum('hqk,hke->hqe', p.astype(MATMUL_DTYPE), v,
                         preferred_element_type=jnp.float32)           # (H,S,dh)
        # Output projection: sum_h ctx_h @ Wo_h  ==  concat(heads) @ Wo.
        ob = jnp.einsum('hqe,hef->hqf', ctx.astype(MATMUL_DTYPE), wo,
                        preferred_element_type=jnp.float32)            # (H,S,D)
        attn_rows.append(jnp.sum(ob, axis=0))                          # (S, D)

    attn = jnp.concatenate(attn_rows, axis=0) + bo                     # (B*S, D)

    # ---- Add & Norm 1 (dropout == identity at inference) ------------------
    h1 = _layernorm(x + attn, g1_ref[0], be1_ref[0])

    # ---- FeedForward -------------------------------------------------------
    f = jnp.dot(h1.astype(MATMUL_DTYPE), w1_ref[0],
                preferred_element_type=jnp.float32) + c1_ref[0]
    f = jnp.maximum(f, 0.0)
    f = jnp.dot(f.astype(MATMUL_DTYPE), w2_ref[0],
                preferred_element_type=jnp.float32) + c2_ref[0]

    # ---- Add & Norm 2 ------------------------------------------------------
    h2 = _layernorm(h1 + f, g2_ref[0], be2_ref[0])
    act_ref[...] = h2

    # ---- final LayerNorm fused into the last layer step --------------------
    @pl.when(l == num_layers - 1)
    def _():
        out_ref[...] = _layernorm(h2, gf_ref[...], bf_ref[...]).astype(out_ref.dtype)


# ------------------------------- wrappers ----------------------------------

def stack_encoder_params(layer_params, num_heads, matmul_dtype=MATMUL_DTYPE):
    """Stack per-layer params on a leading L axis; pre-split heads on the host."""
    H = num_heads
    D = layer_params[0]["wq"].shape[0]
    dh = D // H

    def split_cols(w):    # (D, D), columns ordered h*dh + e  ->  (H, D, dh)
        return jnp.transpose(w.reshape(D, H, dh), (1, 0, 2))

    def split_bias(b):    # (1, D) -> (H, 1, dh)
        return jnp.transpose(b.reshape(1, H, dh), (1, 0, 2))

    wqkv, bqkv, wo, bo = [], [], [], []
    g1, be1, w1, c1, w2, c2, g2, be2 = [], [], [], [], [], [], [], []
    for p in layer_params:
        wqkv.append(jnp.concatenate(
            [split_cols(p["wq"]), split_cols(p["wk"]), split_cols(p["wv"])],
            axis=-1).astype(matmul_dtype))                    # (H, D, 3*dh)
        bqkv.append(jnp.concatenate(
            [split_bias(p["bq"]), split_bias(p["bk"]), split_bias(p["bv"])],
            axis=-1).astype(jnp.float32))                     # (H, 1, 3*dh)
        wo.append(p["wo"].reshape(H, dh, D).astype(matmul_dtype))  # rows h*dh+e
        bo.append(p["bo"].astype(jnp.float32))
        g1.append(p["g1"]); be1.append(p["be1"])
        w1.append(p["w1"].astype(matmul_dtype)); c1.append(p["c1"])
        w2.append(p["w2"].astype(matmul_dtype)); c2.append(p["c2"])
        g2.append(p["g2"]); be2.append(p["be2"])

    stack = lambda xs: jnp.stack(xs, axis=0)
    return {
        "wqkv": stack(wqkv), "bqkv": stack(bqkv), "wo": stack(wo), "bo": stack(bo),
        "g1": stack(g1), "be1": stack(be1),
        "w1": stack(w1), "c1": stack(c1), "w2": stack(w2), "c2": stack(c2),
        "g2": stack(g2), "be2": stack(be2),
    }


def encoder_forward(x, mask, layer_params, final_gamma, final_beta, num_heads,
                    matmul_dtype=MATMUL_DTYPE):
    B, S, D = x.shape
    L = len(layer_params)
    H = num_heads
    assert D % H == 0
    dh = D // H

    sp = stack_encoder_params(layer_params, num_heads, matmul_dtype)
    d_ff = sp["w1"].shape[-1]

    # Flatten batch onto the sublane axis; precompute the additive mask bias.
    x2d = x.reshape(B * S, D)
    bias = (mask.astype(jnp.float32) - 1.0) * 1e9          # (B, 1, S): 0 or -1e9

    kernel = functools.partial(encoder_kernel, num_heads=H, batch=B, seq=S)

    def _const(shape):
        n = len(shape)
        return pl.BlockSpec(tuple(shape), lambda l: (0,) * n)

    def _per_layer(shape):
        n = len(shape)
        return pl.BlockSpec((1,) + tuple(shape), lambda l: (l,) + (0,) * n)

    grid_spec = pltpu.PrefetchScalarGridSpec(
        num_scalar_prefetch=0,
        grid=(L,),
        in_specs=[
            _const((B * S, D)),              # x (read at layer 0 only)
            _const((B, 1, S)),               # additive mask bias
            _per_layer((H, D, 3 * dh)),      # wqkv (head-split, q|k|v fused)
            _per_layer((H, 1, 3 * dh)),      # bqkv
            _per_layer((H, dh, D)),          # wo (head-split)
            _per_layer((1, D)),              # bo
            _per_layer((1, D)),              # gamma1
            _per_layer((1, D)),              # beta1
            _per_layer((D, d_ff)),           # w1
            _per_layer((1, d_ff)),           # c1
            _per_layer((d_ff, D)),           # w2
            _per_layer((1, D)),              # c2
            _per_layer((1, D)),              # gamma2
            _per_layer((1, D)),              # beta2
            _const((1, D)),                  # final gamma
            _const((1, D)),                  # final beta
        ],
        out_specs=pl.BlockSpec((B * S, D), lambda l: (0, 0)),   # resident output
        scratch_shapes=[pltpu.VMEM((B * S, D), jnp.float32)],   # residual stream
    )

    out2d = pl.pallas_call(
        kernel,
        out_shape=jax.ShapeDtypeStruct((B * S, D), x.dtype),
        grid_spec=grid_spec,
        compiler_params=pltpu.CompilerParams(
            # The layer axis carries the residual in VMEM scratch -> sequential.
            dimension_semantics=("arbitrary",),
        ),
    )(x2d, bias,
      sp["wqkv"], sp["bqkv"], sp["wo"], sp["bo"],
      sp["g1"], sp["be1"], sp["w1"], sp["c1"], sp["w2"], sp["c2"],
      sp["g2"], sp["be2"],
      final_gamma.astype(jnp.float32), final_beta.astype(jnp.float32))
    return out2d.reshape(B, S, D)


# ------------------------- deterministic param init ------------------------

def init_layer_params(key, d_model, d_ff):
    ks = jax.random.split(key, 6)
    std = 0.02
    f32 = jnp.float32
    return {
        "wq": std * jax.random.normal(ks[0], (d_model, d_model), f32),
        "bq": jnp.zeros((1, d_model), f32),
        "wk": std * jax.random.normal(ks[1], (d_model, d_model), f32),
        "bk": jnp.zeros((1, d_model), f32),
        "wv": std * jax.random.normal(ks[2], (d_model, d_model), f32),
        "bv": jnp.zeros((1, d_model), f32),
        "wo": std * jax.random.normal(ks[3], (d_model, d_model), f32),
        "bo": jnp.zeros((1, d_model), f32),
        "g1": jnp.ones((1, d_model), f32),
        "be1": jnp.zeros((1, d_model), f32),
        "w1": std * jax.random.normal(ks[4], (d_model, d_ff), f32),
        "c1": jnp.zeros((1, d_ff), f32),
        "w2": std * jax.random.normal(ks[5], (d_ff, d_model), f32),
        "c2": jnp.zeros((1, d_model), f32),
        "g2": jnp.ones((1, d_model), f32),
        "be2": jnp.zeros((1, d_model), f32),
    }


# ---------------------------------- main ------------------------------------

if __name__ == "__main__":
    B, S = 2, 8
    NUM_LAYERS, D_MODEL, NUM_HEADS, D_FF = 2, 32, 4, 64

    root = jax.random.PRNGKey(0)
    k_x, *k_layers = jax.random.split(root, 1 + NUM_LAYERS)

    x = jax.random.normal(k_x, (B, S, D_MODEL), jnp.float32)
    # Padding mask: batch 1 has its last 2 key positions masked out.
    mask = jnp.ones((B, 1, S), jnp.float32)
    mask = mask.at[1, 0, S - 2:].set(0.0)

    layer_params = [init_layer_params(k, D_MODEL, D_FF) for k in k_layers]
    final_gamma = jnp.ones((1, D_MODEL), jnp.float32)
    final_beta = jnp.zeros((1, D_MODEL), jnp.float32)

    fwd = jax.jit(functools.partial(encoder_forward, num_heads=NUM_HEADS))
    out = fwd(x, mask, layer_params, final_gamma, final_beta)
    out = jax.block_until_ready(out)
    assert out.shape == (B, S, D_MODEL)
    # TODO(synk): dropout layers are identity at inference; training-mode dropout
    # would need pltpu.prng_* and is intentionally not implemented.
    print("KERNEL_OK")
</pallas_src>

<mosaic_0001>
module attributes {stable_mosaic.version = 11 : i64} {
  func.func @encoder_kernel(%arg0: i32, %arg1: memref<16x32xf32, #tpu.memory_space<vmem>>, %arg2: memref<2x1x8xf32, #tpu.memory_space<vmem>>, %arg3: memref<1x4x32x24xbf16, #tpu.memory_space<vmem>>, %arg4: memref<1x4x1x24xf32, #tpu.memory_space<vmem>>, %arg5: memref<1x4x8x32xbf16, #tpu.memory_space<vmem>>, %arg6: memref<1x1x32xf32, #tpu.memory_space<vmem>>, %arg7: memref<1x1x32xf32, #tpu.memory_space<vmem>>, %arg8: memref<1x1x32xf32, #tpu.memory_space<vmem>>, %arg9: memref<1x32x64xbf16, #tpu.memory_space<vmem>>, %arg10: memref<1x1x64xf32, #tpu.memory_space<vmem>>, %arg11: memref<1x64x32xbf16, #tpu.memory_space<vmem>>, %arg12: memref<1x1x32xf32, #tpu.memory_space<vmem>>, %arg13: memref<1x1x32xf32, #tpu.memory_space<vmem>>, %arg14: memref<1x1x32xf32, #tpu.memory_space<vmem>>, %arg15: memref<1x32xf32, #tpu.memory_space<vmem>>, %arg16: memref<1x32xf32, #tpu.memory_space<vmem>>, %arg17: memref<16x32xf32, #tpu.memory_space<vmem>>, %arg18: memref<16x32xf32, #tpu.memory_space<vmem>>) attributes {dimension_semantics = [#tpu.dimension_semantics<arbitrary>], iteration_bounds = array<i64: 2>, scalar_prefetch = 0 : i64, scratch_operands = 1 : i64, tpu.core_type = #tpu.core_type<tc>, window_params = [{pipeline_mode = #tpu.pipeline_mode<synchronous>, transform_indices = @transform_0, window_bounds = array<i64: 16, 32>}, {pipeline_mode = #tpu.pipeline_mode<synchronous>, transform_indices = @transform_1, window_bounds = array<i64: 2, 1, 8>}, {transform_indices = @transform_2, window_bounds = array<i64: 1, 4, 32, 24>}, {transform_indices = @transform_3, window_bounds = array<i64: 1, 4, 1, 24>}, {transform_indices = @transform_4, window_bounds = array<i64: 1, 4, 8, 32>}, {transform_indices = @transform_5, window_bounds = array<i64: 1, 1, 32>}, {transform_indices = @transform_6, window_bounds = array<i64: 1, 1, 32>}, {transform_indices = @transform_7, window_bounds = array<i64: 1, 1, 32>}, {transform_indices = @transform_8, window_bounds = array<i64: 1, 32, 64>}, {transform_indices = @transform_9, window_bounds = array<i64: 1, 1, 64>}, {transform_indices = @transform_10, window_bounds = array<i64: 1, 64, 32>}, {transform_indices = @transform_11, window_bounds = array<i64: 1, 1, 32>}, {transform_indices = @transform_12, window_bounds = array<i64: 1, 1, 32>}, {transform_indices = @transform_13, window_bounds = array<i64: 1, 1, 32>}, {pipeline_mode = #tpu.pipeline_mode<synchronous>, transform_indices = @transform_14, window_bounds = array<i64: 1, 32>}, {pipeline_mode = #tpu.pipeline_mode<synchronous>, transform_indices = @transform_15, window_bounds = array<i64: 1, 32>}, {pipeline_mode = #tpu.pipeline_mode<synchronous>, transform_indices = @transform_16, window_bounds = array<i64: 16, 32>}]} {
    %c0_i32 = arith.constant 0 : i32
    %0 = arith.cmpi eq, %arg0, %c0_i32 : i32
    %1 = arith.extui %0 : i1 to i32
    %c0_i32_0 = arith.constant 0 : i32
    %2 = arith.cmpi ne, %1, %c0_i32_0 : i32
    scf.if %2 {
      %c0_75 = arith.constant 0 : index
      %c0_76 = arith.constant 0 : index
      %162 = vector.load %arg1[%c0_75, %c0_76] : memref<16x32xf32, #tpu.memory_space<vmem>>, vector<16x32xf32>
      %c0_77 = arith.constant 0 : index
      %c0_78 = arith.constant 0 : index
      %163 = vector.load %arg18[%c0_77, %c0_78] : memref<16x32xf32, #tpu.memory_space<vmem>>, vector<16x32xf32>
      tpu.vector_store %arg18[%c0_77, %c0_78], %162 {strides = array<i32>} : memref<16x32xf32, #tpu.memory_space<vmem>>, vector<16x32xf32>,
    } else {
    }
    %c0 = arith.constant 0 : index
    %c0_1 = arith.constant 0 : index
    %3 = vector.load %arg18[%c0, %c0_1] : memref<16x32xf32, #tpu.memory_space<vmem>>, vector<16x32xf32>
    %c0_2 = arith.constant 0 : index
    %c0_3 = arith.constant 0 : index
    %c0_4 = arith.constant 0 : index
    %4 = vector.load %arg2[%c0_2, %c0_3, %c0_4] : memref<2x1x8xf32, #tpu.memory_space<vmem>>, vector<2x1x8xf32>
    %c0_5 = arith.constant 0 : index
    %c0_6 = arith.constant 0 : index
    %c0_7 = arith.constant 0 : index
    %c0_8 = arith.constant 0 : index
    %5 = vector.load %arg3[%c0_5, %c0_6, %c0_7, %c0_8] : memref<1x4x32x24xbf16, #tpu.memory_space<vmem>>, vector<1x4x32x24xbf16>
    %6 = vector.shape_cast %5 : vector<1x4x32x24xbf16> to vector<4x32x24xbf16>
    %c0_9 = arith.constant 0 : index
    %c0_10 = arith.constant 0 : index
    %c0_11 = arith.constant 0 : index
    %c0_12 = arith.constant 0 : index
    %7 = vector.load %arg4[%c0_9, %c0_10, %c0_11, %c0_12] : memref<1x4x1x24xf32, #tpu.memory_space<vmem>>, vector<1x4x1x24xf32>
    %8 = vector.shape_cast %7 : vector<1x4x1x24xf32> to vector<4x1x24xf32>
    %c0_13 = arith.constant 0 : index
    %c0_14 = arith.constant 0 : index
    %c0_15 = arith.constant 0 : index
    %c0_16 = arith.constant 0 : index
    %9 = vector.load %arg5[%c0_13, %c0_14, %c0_15, %c0_16] : memref<1x4x8x32xbf16, #tpu.memory_space<vmem>>, vector<1x4x8x32xbf16>
    %10 = vector.shape_cast %9 : vector<1x4x8x32xbf16> to vector<4x8x32xbf16>
    %c0_17 = arith.constant 0 : index
    %c0_18 = arith.constant 0 : index
    %c0_19 = arith.constant 0 : index
    %11 = vector.load %arg6[%c0_17, %c0_18, %c0_19] : memref<1x1x32xf32, #tpu.memory_space<vmem>>, vector<1x1x32xf32>
    %12 = vector.shape_cast %11 : vector<1x1x32xf32> to vector<1x32xf32>
    %13 = vector.extract_strided_slice %3 {offsets = [0, 0], sizes = [8, 32], strides = [1, 1]} : vector<16x32xf32> to vector<8x32xf32>
    %14 = arith.truncf %13 : vector<8x32xf32> to vector<8x32xbf16>
    %15 = vector.shape_cast %14 : vector<8x32xbf16> to vector<1x8x32xbf16>
    %16 = vector.shape_cast %15 : vector<1x8x32xbf16> to vector<1x8x32xbf16>
    %17 = vector.broadcast %16 : vector<1x8x32xbf16> to vector<4x8x32xbf16>
    "tpu.trace_start"() <{level = 10 : i32, message = "hsd,hde->hse"}> : () -> ()
    %cst = arith.constant dense<0.000000e+00> : vector<4x8x24xf32>
    %18 = tpu.matmul %17, %6, %cst {dimension_numbers = #tpu.dot_dimension_numbers<[2], [1], [1], [2], [0, 0, 0, 1, 1, 2], [0], [0]>} : vector<4x8x32xbf16>, vector<4x32x24xbf16>, vector<4x8x24xf32> -> vector<4x8x24xf32>
    "tpu.trace_stop"() : () -> ()
    %19 = vector.broadcast %8 : vector<4x1x24xf32> to vector<4x8x24xf32>
    %20 = arith.addf %18, %19 : vector<4x8x24xf32>
    %21 = vector.extract_strided_slice %20 {offsets = [0, 0, 0], sizes = [4, 8, 8], strides = [1, 1, 1]} : vector<4x8x24xf32> to vector<4x8x8xf32>
    %22 = arith.truncf %21 : vector<4x8x8xf32> to vector<4x8x8xbf16>
    %23 = vector.extract_strided_slice %20 {offsets = [0, 0, 8], sizes = [4, 8, 8], strides = [1, 1, 1]} : vector<4x8x24xf32> to vector<4x8x8xf32>
    %24 = arith.truncf %23 : vector<4x8x8xf32> to vector<4x8x8xbf16>
    %25 = vector.extract_strided_slice %20 {offsets = [0, 0, 16], sizes = [4, 8, 8], strides = [1, 1, 1]} : vector<4x8x24xf32> to vector<4x8x8xf32>
    %26 = arith.truncf %25 : vector<4x8x8xf32> to vector<4x8x8xbf16>
    "tpu.trace_start"() <{level = 10 : i32, message = "hqe,hke->hqk"}> : () -> ()
    %cst_20 = arith.constant dense<0.000000e+00> : vector<4x8x8xf32>
    %27 = tpu.matmul %22, %24, %cst_20 {dimension_numbers = #tpu.dot_dimension_numbers<[2], [2], [1], [1], [0, 0, 0, 1, 1, 1], [0], [0]>} : vector<4x8x8xbf16>, vector<4x8x8xbf16>, vector<4x8x8xf32> -> vector<4x8x8xf32>
    "tpu.trace_stop"() : () -> ()
    %cst_21 = arith.constant 0.353553385 : f32
    %28 = vector.broadcast %cst_21 : f32 to vector<4x8x8xf32>
    %29 = arith.mulf %27, %28 : vector<4x8x8xf32>
    %30 = vector.extract_strided_slice %4 {offsets = [0, 0, 0], sizes = [1, 1, 8], strides = [1, 1, 1]} : vector<2x1x8xf32> to vector<1x1x8xf32>
    %31 = vector.broadcast %30 : vector<1x1x8xf32> to vector<4x8x8xf32>
    %32 = arith.addf %29, %31 : vector<4x8x8xf32>
    %cst_22 = arith.constant dense<0xFF800000> : vector<4x8xf32>
    %33 = vector.multi_reduction <maximumf>, %32, %cst_22 [2] : vector<4x8x8xf32> to vector<4x8xf32>
    %34 = vector.shape_cast %33 : vector<4x8xf32> to vector<4x8x1xf32>
    %35 = vector.broadcast %34 : vector<4x8x1xf32> to vector<4x8x8xf32>
    %36 = arith.subf %32, %35 : vector<4x8x8xf32>
    %37 = math.exp %36 : vector<4x8x8xf32>
    %cst_23 = arith.constant dense<0.000000e+00> : vector<4x8xf32>
    %38 = vector.multi_reduction <add>, %37, %cst_23 [2] : vector<4x8x8xf32> to vector<4x8xf32>
    %39 = vector.shape_cast %38 : vector<4x8xf32> to vector<4x8x1xf32>
    %40 = tpu.reciprocal %39 {approx = true} : vector<4x8x1xf32> -> vector<4x8x1xf32>
    %41 = vector.broadcast %40 : vector<4x8x1xf32> to vector<4x8x8xf32>
    %42 = arith.mulf %37, %41 : vector<4x8x8xf32>
    %43 = arith.truncf %42 : vector<4x8x8xf32> to vector<4x8x8xbf16>
    "tpu.trace_start"() <{level = 10 : i32, message = "hqk,hke->hqe"}> : () -> ()
    %cst_24 = arith.constant dense<0.000000e+00> : vector<4x8x8xf32>
    %44 = tpu.matmul %43, %26, %cst_24 {dimension_numbers = #tpu.dot_dimension_numbers<[2], [1], [1], [2], [0, 0, 0, 1, 1, 2], [0], [0]>} : vector<4x8x8xbf16>, vector<4x8x8xbf16>, vector<4x8x8xf32> -> vector<4x8x8xf32>
    "tpu.trace_stop"() : () -> ()
    %45 = arith.truncf %44 : vector<4x8x8xf32> to vector<4x8x8xbf16>
    "tpu.trace_start"() <{level = 10 : i32, message = "hqe,hef->hqf"}> : () -> ()
    %cst_25 = arith.constant dense<0.000000e+00> : vector<4x8x32xf32>
    %46 = tpu.matmul %45, %10, %cst_25 {dimension_numbers = #tpu.dot_dimension_numbers<[2], [1], [1], [2], [0, 0, 0, 1, 1, 2], [0], [0]>} : vector<4x8x8xbf16>, vector<4x8x32xbf16>, vector<4x8x32xf32> -> vector<4x8x32xf32>
    "tpu.trace_stop"() : () -> ()
    %cst_26 = arith.constant dense<0.000000e+00> : vector<8x32xf32>
    %47 = vector.multi_reduction <add>, %46, %cst_26 [0] : vector<4x8x32xf32> to vector<8x32xf32>
    %48 = vector.extract_strided_slice %3 {offsets = [8, 0], sizes = [8, 32], strides = [1, 1]} : vector<16x32xf32> to vector<8x32xf32>
    %49 = arith.truncf %48 : vector<8x32xf32> to vector<8x32xbf16>
    %50 = vector.shape_cast %49 : vector<8x32xbf16> to vector<1x8x32xbf16>
    %51 = vector.shape_cast %50 : vector<1x8x32xbf16> to vector<1x8x32xbf16>
    %52 = vector.broadcast %51 : vector<1x8x32xbf16> to vector<4x8x32xbf16>
    "tpu.trace_start"() <{level = 10 : i32, message = "hsd,hde->hse"}> : () -> ()
    %cst_27 = arith.constant dense<0.000000e+00> : vector<4x8x24xf32>
    %53 = tpu.matmul %52, %6, %cst_27 {dimension_numbers = #tpu.dot_dimension_numbers<[2], [1], [1], [2], [0, 0, 0, 1, 1, 2], [0], [0]>} : vector<4x8x32xbf16>, vector<4x32x24xbf16>, vector<4x8x24xf32> -> vector<4x8x24xf32>
    "tpu.trace_stop"() : () -> ()
    %54 = vector.broadcast %8 : vector<4x1x24xf32> to vector<4x8x24xf32>
    %55 = arith.addf %53, %54 : vector<4x8x24xf32>
    %56 = vector.extract_strided_slice %55 {offsets = [0, 0, 0], sizes = [4, 8, 8], strides = [1, 1, 1]} : vector<4x8x24xf32> to vector<4x8x8xf32>
    %57 = arith.truncf %56 : vector<4x8x8xf32> to vector<4x8x8xbf16>
    %58 = vector.extract_strided_slice %55 {offsets = [0, 0, 8], sizes = [4, 8, 8], strides = [1, 1, 1]} : vector<4x8x24xf32> to vector<4x8x8xf32>
    %59 = arith.truncf %58 : vector<4x8x8xf32> to vector<4x8x8xbf16>
    %60 = vector.extract_strided_slice %55 {offsets = [0, 0, 16], sizes = [4, 8, 8], strides = [1, 1, 1]} : vector<4x8x24xf32> to vector<4x8x8xf32>
    %61 = arith.truncf %60 : vector<4x8x8xf32> to vector<4x8x8xbf16>
    "tpu.trace_start"() <{level = 10 : i32, message = "hqe,hke->hqk"}> : () -> ()
    %cst_28 = arith.constant dense<0.000000e+00> : vector<4x8x8xf32>
    %62 = tpu.matmul %57, %59, %cst_28 {dimension_numbers = #tpu.dot_dimension_numbers<[2], [2], [1], [1], [0, 0, 0, 1, 1, 1], [0], [0]>} : vector<4x8x8xbf16>, vector<4x8x8xbf16>, vector<4x8x8xf32> -> vector<4x8x8xf32>
    "tpu.trace_stop"() : () -> ()
    %cst_29 = arith.constant 0.353553385 : f32
    %63 = vector.broadcast %cst_29 : f32 to vector<4x8x8xf32>
    %64 = arith.mulf %62, %63 : vector<4x8x8xf32>
    %65 = vector.extract_strided_slice %4 {offsets = [1, 0, 0], sizes = [1, 1, 8], strides = [1, 1, 1]} : vector<2x1x8xf32> to vector<1x1x8xf32>
    %66 = vector.broadcast %65 : vector<1x1x8xf32> to vector<4x8x8xf32>
    %67 = arith.addf %64, %66 : vector<4x8x8xf32>
    %cst_30 = arith.constant dense<0xFF800000> : vector<4x8xf32>
    %68 = vector.multi_reduction <maximumf>, %67, %cst_30 [2] : vector<4x8x8xf32> to vector<4x8xf32>
    %69 = vector.shape_cast %68 : vector<4x8xf32> to vector<4x8x1xf32>
    %70 = vector.broadcast %69 : vector<4x8x1xf32> to vector<4x8x8xf32>
    %71 = arith.subf %67, %70 : vector<4x8x8xf32>
    %72 = math.exp %71 : vector<4x8x8xf32>
    %cst_31 = arith.constant dense<0.000000e+00> : vector<4x8xf32>
    %73 = vector.multi_reduction <add>, %72, %cst_31 [2] : vector<4x8x8xf32> to vector<4x8xf32>
    %74 = vector.shape_cast %73 : vector<4x8xf32> to vector<4x8x1xf32>
    %75 = tpu.reciprocal %74 {approx = true} : vector<4x8x1xf32> -> vector<4x8x1xf32>
    %76 = vector.broadcast %75 : vector<4x8x1xf32> to vector<4x8x8xf32>
    %77 = arith.mulf %72, %76 : vector<4x8x8xf32>
    %78 = arith.truncf %77 : vector<4x8x8xf32> to vector<4x8x8xbf16>
    "tpu.trace_start"() <{level = 10 : i32, message = "hqk,hke->hqe"}> : () -> ()
    %cst_32 = arith.constant dense<0.000000e+00> : vector<4x8x8xf32>
    %79 = tpu.matmul %78, %61, %cst_32 {dimension_numbers = #tpu.dot_dimension_numbers<[2], [1], [1], [2], [0, 0, 0, 1, 1, 2], [0], [0]>} : vector<4x8x8xbf16>, vector<4x8x8xbf16>, vector<4x8x8xf32> -> vector<4x8x8xf32>
    "tpu.trace_stop"() : () -> ()
    %80 = arith.truncf %79 : vector<4x8x8xf32> to vector<4x8x8xbf16>
    "tpu.trace_start"() <{level = 10 : i32, message = "hqe,hef->hqf"}> : () -> ()
    %cst_33 = arith.constant dense<0.000000e+00> : vector<4x8x32xf32>
    %81 = tpu.matmul %80, %10, %cst_33 {dimension_numbers = #tpu.dot_dimension_numbers<[2], [1], [1], [2], [0, 0, 0, 1, 1, 2], [0], [0]>} : vector<4x8x8xbf16>, vector<4x8x32xbf16>, vector<4x8x32xf32> -> vector<4x8x32xf32>
    "tpu.trace_stop"() : () -> ()
    %cst_34 = arith.constant dense<0.000000e+00> : vector<8x32xf32>
    %82 = vector.multi_reduction <add>, %81, %cst_34 [0] : vector<4x8x32xf32> to vector<8x32xf32>
    %83 = tpu.concatenate %47, %82 in 0 : vector<8x32xf32>, vector<8x32xf32> -> vector<16x32xf32>
    %84 = vector.broadcast %12 : vector<1x32xf32> to vector<16x32xf32>
    %85 = arith.addf %83, %84 : vector<16x32xf32>
    %86 = arith.addf %3, %85 : vector<16x32xf32>
    %c0_35 = arith.constant 0 : index
    %c0_36 = arith.constant 0 : index
    %c0_37 = arith.constant 0 : index
    %87 = vector.load %arg7[%c0_35, %c0_36, %c0_37] : memref<1x1x32xf32, #tpu.memory_space<vmem>>, vector<1x1x32xf32>
    %88 = vector.shape_cast %87 : vector<1x1x32xf32> to vector<1x32xf32>
    %c0_38 = arith.constant 0 : index
    %c0_39 = arith.constant 0 : index
    %c0_40 = arith.constant 0 : index
    %89 = vector.load %arg8[%c0_38, %c0_39, %c0_40] : memref<1x1x32xf32, #tpu.memory_space<vmem>>, vector<1x1x32xf32>
    %90 = vector.shape_cast %89 : vector<1x1x32xf32> to vector<1x32xf32>
    %cst_41 = arith.constant dense<0.000000e+00> : vector<16xf32>
    %91 = vector.multi_reduction <add>, %86, %cst_41 [1] : vector<16x32xf32> to vector<16xf32>
    %92 = vector.shape_cast %91 : vector<16xf32> to vector<16x1xf32>
    %cst_42 = arith.constant 3.200000e+01 : f32
    %93 = vector.broadcast %cst_42 : f32 to vector<16x1xf32>
    %94 = arith.divf %92, %93 : vector<16x1xf32>
    %95 = vector.broadcast %94 : vector<16x1xf32> to vector<16x32xf32>
    %96 = arith.subf %86, %95 : vector<16x32xf32>
    %97 = arith.mulf %96, %96 : vector<16x32xf32>
    %cst_43 = arith.constant dense<0.000000e+00> : vector<16xf32>
    %98 = vector.multi_reduction <add>, %97, %cst_43 [1] : vector<16x32xf32> to vector<16xf32>
    %99 = vector.shape_cast %98 : vector<16xf32> to vector<16x1xf32>
    %cst_44 = arith.constant 3.200000e+01 : f32
    %100 = vector.broadcast %cst_44 : f32 to vector<16x1xf32>
    %101 = arith.divf %99, %100 : vector<16x1xf32>
    %102 = vector.broadcast %94 : vector<16x1xf32> to vector<16x32xf32>
    %103 = arith.subf %86, %102 : vector<16x32xf32>
    %cst_45 = arith.constant 9.99999997E-7 : f32
    %104 = vector.broadcast %cst_45 : f32 to vector<16x1xf32>
    %105 = arith.addf %101, %104 : vector<16x1xf32>
    %106 = math.rsqrt %105 : vector<16x1xf32>
    %107 = vector.broadcast %106 : vector<16x1xf32> to vector<16x32xf32>
    %108 = arith.mulf %103, %107 : vector<16x32xf32>
    %109 = vector.broadcast %88 : vector<1x32xf32> to vector<16x32xf32>
    %110 = arith.mulf %108, %109 : vector<16x32xf32>
    %111 = vector.broadcast %90 : vector<1x32xf32> to vector<16x32xf32>
    %112 = arith.addf %110, %111 : vector<16x32xf32>
    %113 = arith.truncf %112 : vector<16x32xf32> to vector<16x32xbf16>
    %c0_46 = arith.constant 0 : index
    %c0_47 = arith.constant 0 : index
    %c0_48 = arith.constant 0 : index
    %114 = vector.load %arg9[%c0_46, %c0_47, %c0_48] : memref<1x32x64xbf16, #tpu.memory_space<vmem>>, vector<1x32x64xbf16>
    %115 = vector.shape_cast %114 : vector<1x32x64xbf16> to vector<32x64xbf16>
    %cst_49 = arith.constant dense<0.000000e+00> : vector<16x64xf32>
    %116 = tpu.matmul %113, %115, %cst_49 {dimension_numbers = #tpu.dot_dimension_numbers<[1], [0], [0], [1], [0, 0, 1, 1], [], []>} : vector<16x32xbf16>, vector<32x64xbf16>, vector<16x64xf32> -> vector<16x64xf32>
    %c0_50 = arith.constant 0 : index
    %c0_51 = arith.constant 0 : index
    %c0_52 = arith.constant 0 : index
    %117 = vector.load %arg10[%c0_50, %c0_51, %c0_52] : memref<1x1x64xf32, #tpu.memory_space<vmem>>, vector<1x1x64xf32>
    %118 = vector.shape_cast %117 : vector<1x1x64xf32> to vector<1x64xf32>
    %119 = vector.broadcast %118 : vector<1x64xf32> to vector<16x64xf32>
    %120 = arith.addf %116, %119 : vector<16x64xf32>
    %cst_53 = arith.constant 0.000000e+00 : f32
    %121 = vector.broadcast %cst_53 : f32 to vector<16x64xf32>
    %122 = arith.maximumf %120, %121 : vector<16x64xf32>
    %123 = arith.truncf %122 : vector<16x64xf32> to vector<16x64xbf16>
    %c0_54 = arith.constant 0 : index
    %c0_55 = arith.constant 0 : index
    %c0_56 = arith.constant 0 : index
    %124 = vector.load %arg11[%c0_54, %c0_55, %c0_56] : memref<1x64x32xbf16, #tpu.memory_space<vmem>>, vector<1x64x32xbf16>
    %125 = vector.shape_cast %124 : vector<1x64x32xbf16> to vector<64x32xbf16>
    %cst_57 = arith.constant dense<0.000000e+00> : vector<16x32xf32>
    %126 = tpu.matmul %123, %125, %cst_57 {dimension_numbers = #tpu.dot_dimension_numbers<[1], [0], [0], [1], [0, 0, 1, 1], [], []>} : vector<16x64xbf16>, vector<64x32xbf16>, vector<16x32xf32> -> vector<16x32xf32>
    %c0_58 = arith.constant 0 : index
    %c0_59 = arith.constant 0 : index
    %c0_60 = arith.constant 0 : index
    %127 = vector.load %arg12[%c0_58, %c0_59, %c0_60] : memref<1x1x32xf32, #tpu.memory_space<vmem>>, vector<1x1x32xf32>
    %128 = vector.shape_cast %127 : vector<1x1x32xf32> to vector<1x32xf32>
    %129 = vector.broadcast %128 : vector<1x32xf32> to vector<16x32xf32>
    %130 = arith.addf %126, %129 : vector<16x32xf32>
    %131 = arith.addf %112, %130 : vector<16x32xf32>
    %c0_61 = arith.constant 0 : index
    %c0_62 = arith.constant 0 : index
    %c0_63 = arith.constant 0 : index
    %132 = vector.load %arg13[%c0_61, %c0_62, %c0_63] : memref<1x1x32xf32, #tpu.memory_space<vmem>>, vector<1x1x32xf32>
    %133 = vector.shape_cast %132 : vector<1x1x32xf32> to vector<1x32xf32>
    %c0_64 = arith.constant 0 : index
    %c0_65 = arith.constant 0 : index
    %c0_66 = arith.constant 0 : index
    %134 = vector.load %arg14[%c0_64, %c0_65, %c0_66] : memref<1x1x32xf32, #tpu.memory_space<vmem>>, vector<1x1x32xf32>
    %135 = vector.shape_cast %134 : vector<1x1x32xf32> to vector<1x32xf32>
    %cst_67 = arith.constant dense<0.000000e+00> : vector<16xf32>
    %136 = vector.multi_reduction <add>, %131, %cst_67 [1] : vector<16x32xf32> to vector<16xf32>
    %137 = vector.shape_cast %136 : vector<16xf32> to vector<16x1xf32>
    %cst_68 = arith.constant 3.200000e+01 : f32
    %138 = vector.broadcast %cst_68 : f32 to vector<16x1xf32>
    %139 = arith.divf %137, %138 : vector<16x1xf32>
    %140 = vector.broadcast %139 : vector<16x1xf32> to vector<16x32xf32>
    %141 = arith.subf %131, %140 : vector<16x32xf32>
    %142 = arith.mulf %141, %141 : vector<16x32xf32>
    %cst_69 = arith.constant dense<0.000000e+00> : vector<16xf32>
    %143 = vector.multi_reduction <add>, %142, %cst_69 [1] : vector<16x32xf32> to vector<16xf32>
    %144 = vector.shape_cast %143 : vector<16xf32> to vector<16x1xf32>
    %cst_70 = arith.constant 3.200000e+01 : f32
    %145 = vector.broadcast %cst_70 : f32 to vector<16x1xf32>
    %146 = arith.divf %144, %145 : vector<16x1xf32>
    %147 = vector.broadcast %139 : vector<16x1xf32> to vector<16x32xf32>
    %148 = arith.subf %131, %147 : vector<16x32xf32>
    %cst_71 = arith.constant 9.99999997E-7 : f32
    %149 = vector.broadcast %cst_71 : f32 to vector<16x1xf32>
    %150 = arith.addf %146, %149 : vector<16x1xf32>
    %151 = math.rsqrt %150 : vector<16x1xf32>
    %152 = vector.broadcast %151 : vector<16x1xf32> to vector<16x32xf32>
    %153 = arith.mulf %148, %152 : vector<16x32xf32>
    %154 = vector.broadcast %133 : vector<1x32xf32> to vector<16x32xf32>
    %155 = arith.mulf %153, %154 : vector<16x32xf32>
    %156 = vector.broadcast %135 : vector<1x32xf32> to vector<16x32xf32>
    %157 = arith.addf %155, %156 : vector<16x32xf32>
    %c0_72 = arith.constant 0 : index
    %c0_73 = arith.constant 0 : index
    %158 = vector.load %arg18[%c0_72, %c0_73] : memref<16x32xf32, #tpu.memory_space<vmem>>, vector<16x32xf32>
    tpu.vector_store %arg18[%c0_72, %c0_73], %157 {strides = array<i32>} : memref<16x32xf32, #tpu.memory_space<vmem>>, vector<16x32xf32>,
    %c1_i32 = arith.constant 1 : i32
    %159 = arith.cmpi eq, %arg0, %c1_i32 : i32
    %160 = arith.extui %159 : i1 to i32
    %c0_i32_74 = arith.constant 0 : i32
    %161 = arith.cmpi ne, %160, %c0_i32_74 : i32
    scf.if %161 {
      %c0_75 = arith.constant 0 : index
      %c0_76 = arith.constant 0 : index
      %162 = vector.load %arg15[%c0_75, %c0_76] : memref<1x32xf32, #tpu.memory_space<vmem>>, vector<1x32xf32>
      %c0_77 = arith.constant 0 : index
      %c0_78 = arith.constant 0 : index
      %163 = vector.load %arg16[%c0_77, %c0_78] : memref<1x32xf32, #tpu.memory_space<vmem>>, vector<1x32xf32>
      %cst_79 = arith.constant dense<0.000000e+00> : vector<16xf32>
      %164 = vector.multi_reduction <add>, %157, %cst_79 [1] : vector<16x32xf32> to vector<16xf32>
      %165 = vector.shape_cast %164 : vector<16xf32> to vector<16x1xf32>
      %cst_80 = arith.constant 3.200000e+01 : f32
      %166 = vector.broadcast %cst_80 : f32 to vector<16x1xf32>
      %167 = arith.divf %165, %166 : vector<16x1xf32>
      %168 = vector.broadcast %167 : vector<16x1xf32> to vector<16x32xf32>
      %169 = arith.subf %157, %168 : vector<16x32xf32>
      %170 = arith.mulf %169, %169 : vector<16x32xf32>
      %cst_81 = arith.constant dense<0.000000e+00> : vector<16xf32>
      %171 = vector.multi_reduction <add>, %170, %cst_81 [1] : vector<16x32xf32> to vector<16xf32>
      %172 = vector.shape_cast %171 : vector<16xf32> to vector<16x1xf32>
      %cst_82 = arith.constant 3.200000e+01 : f32
      %173 = vector.broadcast %cst_82 : f32 to vector<16x1xf32>
      %174 = arith.divf %172, %173 : vector<16x1xf32>
      %175 = vector.broadcast %167 : vector<16x1xf32> to vector<16x32xf32>
      %176 = arith.subf %157, %175 : vector<16x32xf32>
      %cst_83 = arith.constant 9.99999997E-7 : f32
      %177 = vector.broadcast %cst_83 : f32 to vector<16x1xf32>
      %178 = arith.addf %174, %177 : vector<16x1xf32>
      %179 = math.rsqrt %178 : vector<16x1xf32>
      %180 = vector.broadcast %179 : vector<16x1xf32> to vector<16x32xf32>
      %181 = arith.mulf %176, %180 : vector<16x32xf32>
      %182 = vector.broadcast %162 : vector<1x32xf32> to vector<16x32xf32>
      %183 = arith.mulf %181, %182 : vector<16x32xf32>
      %184 = vector.broadcast %163 : vector<1x32xf32> to vector<16x32xf32>
      %185 = arith.addf %183, %184 : vector<16x32xf32>
      %c0_84 = arith.constant 0 : index
      %c0_85 = arith.constant 0 : index
      %186 = vector.load %arg17[%c0_84, %c0_85] : memref<16x32xf32, #tpu.memory_space<vmem>>, vector<16x32xf32>
      tpu.vector_store %arg17[%c0_84, %c0_85], %185 {strides = array<i32>} : memref<16x32xf32, #tpu.memory_space<vmem>>, vector<16x32xf32>,
    } else {
    }
    return
  }
  func.func @transform_0(%arg0: i32) -> (i32, i32) {
    %c0_i32 = arith.constant 0 : i32
    %c0_i32_0 = arith.constant 0 : i32
    %c0_i32_1 = arith.constant 0 : i32
    return %c0_i32, %c0_i32_0 : i32, i32
  }
  func.func @transform_1(%arg0: i32) -> (i32, i32, i32) {
    %c0_i32 = arith.constant 0 : i32
    %c0_i32_0 = arith.constant 0 : i32
    %c0_i32_1 = arith.constant 0 : i32
    %c0_i32_2 = arith.constant 0 : i32
    return %c0_i32, %c0_i32_0, %c0_i32_1 : i32, i32, i32
  }
  func.func @transform_2(%arg0: i32) -> (i32, i32, i32, i32) {
    %c0_i32 = arith.constant 0 : i32
    %c0_i32_0 = arith.constant 0 : i32
    %c0_i32_1 = arith.constant 0 : i32
    %c0_i32_2 = arith.constant 0 : i32
    return %arg0, %c0_i32, %c0_i32_0, %c0_i32_1 : i32, i32, i32, i32
  }
  func.func @transform_3(%arg0: i32) -> (i32, i32, i32, i32) {
    %c0_i32 = arith.constant 0 : i32
    %c0_i32_0 = arith.constant 0 : i32
    %c0_i32_1 = arith.constant 0 : i32
    %c0_i32_2 = arith.constant 0 : i32
    return %arg0, %c0_i32, %c0_i32_0, %c0_i32_1 : i32, i32, i32, i32
  }
  func.func @transform_4(%arg0: i32) -> (i32, i32, i32, i32) {
    %c0_i32 = arith.constant 0 : i32
    %c0_i32_0 = arith.constant 0 : i32
    %c0_i32_1 = arith.constant 0 : i32
    %c0_i32_2 = arith.constant 0 : i32
    return %arg0, %c0_i32, %c0_i32_0, %c0_i32_1 : i32, i32, i32, i32
  }
  func.func @transform_5(%arg0: i32) -> (i32, i32, i32) {
    %c0_i32 = arith.constant 0 : i32
    %c0_i32_0 = arith.constant 0 : i32
    %c0_i32_1 = arith.constant 0 : i32
    return %arg0, %c0_i32, %c0_i32_0 : i32, i32, i32
  }
  func.func @transform_6(%arg0: i32) -> (i32, i32, i32) {
    %c0_i32 = arith.constant 0 : i32
    %c0_i32_0 = arith.constant 0 : i32
    %c0_i32_1 = arith.constant 0 : i32
    return %arg0, %c0_i32, %c0_i32_0 : i32, i32, i32
  }
  func.func @transform_7(%arg0: i32) -> (i32, i32, i32) {
    %c0_i32 = arith.constant 0 : i32
    %c0_i32_0 = arith.constant 0 : i32
    %c0_i32_1 = arith.constant 0 : i32
    return %arg0, %c0_i32, %c0_i32_0 : i32, i32, i32
  }
  func.func @transform_8(%arg0: i32) -> (i32, i32, i32) {
    %c0_i32 = arith.constant 0 : i32
    %c0_i32_0 = arith.constant 0 : i32
    %c0_i32_1 = arith.constant 0 : i32
    return %arg0, %c0_i32, %c0_i32_0 : i32, i32, i32
  }
  func.func @transform_9(%arg0: i32) -> (i32, i32, i32) {
    %c0_i32 = arith.constant 0 : i32
    %c0_i32_0 = arith.constant 0 : i32
    %c0_i32_1 = arith.constant 0 : i32
    return %arg0, %c0_i32, %c0_i32_0 : i32, i32, i32
  }
  func.func @transform_10(%arg0: i32) -> (i32, i32, i32) {
    %c0_i32 = arith.constant 0 : i32
    %c0_i32_0 = arith.constant 0 : i32
    %c0_i32_1 = arith.constant 0 : i32
    return %arg0, %c0_i32, %c0_i32_0 : i32, i32, i32
  }
  func.func @transform_11(%arg0: i32) -> (i32, i32, i32) {
    %c0_i32 = arith.constant 0 : i32
    %c0_i32_0 = arith.constant 0 : i32
    %c0_i32_1 = arith.constant 0 : i32
    return %arg0, %c0_i32, %c0_i32_0 : i32, i32, i32
  }
  func.func @transform_12(%arg0: i32) -> (i32, i32, i32) {
    %c0_i32 = arith.constant 0 : i32
    %c0_i32_0 = arith.constant 0 : i32
    %c0_i32_1 = arith.constant 0 : i32
    return %arg0, %c0_i32, %c0_i32_0 : i32, i32, i32
  }
  func.func @transform_13(%arg0: i32) -> (i32, i32, i32) {
    %c0_i32 = arith.constant 0 : i32
    %c0_i32_0 = arith.constant 0 : i32
    %c0_i32_1 = arith.constant 0 : i32
    return %arg0, %c0_i32, %c0_i32_0 : i32, i32, i32
  }
  func.func @transform_14(%arg0: i32) -> (i32, i32) {
    %c0_i32 = arith.constant 0 : i32
    %c0_i32_0 = arith.constant 0 : i32
    %c0_i32_1 = arith.constant 0 : i32
    return %c0_i32, %c0_i32_0 : i32, i32
  }
  func.func @transform_15(%arg0: i32) -> (i32, i32) {
    %c0_i32 = arith.constant 0 : i32
    %c0_i32_0 = arith.constant 0 : i32
    %c0_i32_1 = arith.constant 0 : i32
    return %c0_i32, %c0_i32_0 : i32, i32
  }
  func.func @transform_16(%arg0: i32) -> (i32, i32) {
    %c0_i32 = arith.constant 0 : i32
    %c0_i32_0 = arith.constant 0 : i32
    %c0_i32_1 = arith.constant 0 : i32
    return %c0_i32, %c0_i32_0 : i32, i32
  }
}

</mosaic_0001>

<bundles_post_ra>
// kernel: encoder_forward.1
= control target key start
LH: loop header
LB: loop body
LE: loop exit
PB: predicated region body
PF: predicated region fallthrough
CT: control target
= control target key end

     0   :  { %s4004_s0 = inlined_call_operand.vmem [shape: f32[16,32], index: 0, kind: input, shape index: {}]   ;;  %s4005_s1 = inlined_call_operand.vmem [shape: f32[2,1,8], index: 1, kind: input, shape index: {}]   ;;  %s4006_s2 = inlined_call_operand.vmem [shape: bf16[2,4,32,24], index: 2, kind: input, shape index: {}]   ;;  %s4007_s3 = inlined_call_operand.vmem [shape: f32[2,4,1,24], index: 3, kind: input, shape index: {}]   ;;  %s4008_s4 = inlined_call_operand.vmem [shape: bf16[2,4,8,32], index: 4, kind: input, shape index: {}]   ;;  %s4009_s5 = inlined_call_operand.vmem [shape: f32[2,1,32], index: 5, kind: input, shape index: {}]   ;;  %s4010_s6 = inlined_call_operand.vmem [shape: f32[2,1,32], index: 6, kind: input, shape index: {}]   ;;  %s4011_s7 = inlined_call_operand.vmem [shape: f32[2,1,32], index: 7, kind: input, shape index: {}]   ;;  %s4012_s8 = inlined_call_operand.vmem [shape: bf16[2,32,64], index: 8, kind: input, shape index: {}]   ;;  %s4013_s9 = inlined_call_operand.vmem [shape: f32[2,1,64], index: 9, kind: input, shape index: {}]   ;;  %s4014_s10 = inlined_call_operand.vmem [shape: bf16[2,64,32], index: 10, kind: input, shape index: {}]   ;;  %s4015_s11 = inlined_call_operand.vmem [shape: f32[2,1,32], index: 11, kind: input, shape index: {}]   ;;  %s4016_s12 = inlined_call_operand.vmem [shape: f32[2,1,32], index: 12, kind: input, shape index: {}]   ;;  %s4017_s13 = inlined_call_operand.vmem [shape: f32[2,1,32], index: 13, kind: input, shape index: {}]   ;;  %s4018_s14 = inlined_call_operand.vmem [shape: f32[1,32], index: 14, kind: input, shape index: {}]   ;;  %s4019_s15 = inlined_call_operand.vmem [shape: f32[1,32], index: 15, kind: input, shape index: {}]   ;;  %s4020_s16 = inlined_call_operand.hbm [shape: f32[16,32], index: 16, kind: output, shape index: {}]  }
   0x1   :  { %4025 = sst [smem:[#allocation7_spill]] %s4004_s0 }
   0x2   :  { %4026 = sst [smem:[#allocation8_spill]] %s4005_s1 }
   0x3   :  { %4027 = sst [smem:[#allocation9_spill]] %s4006_s2 }
   0x4   :  { %4028 = sst [smem:[#allocation10_spill]] %s4007_s3 }
   0x5   :  { %4029 = sst [smem:[#allocation11_spill]] %s4008_s4 }
   0x6   :  { %4030 = sst [smem:[#allocation12_spill]] %s4018_s14 }
   0x7   :  { %4031 = sst [smem:[#allocation13_spill]] %s4019_s15 }
   0x8   :  { %4032 = sst [smem:[#allocation14_spill]] %s4020_s16 }
   0x9   :  { %21 = vsyncpa [#allocation4], 0  ;;  %s3481_s21 = smov 0  }
   0xa LB: > { %4033 = sst [smem:[#allocation6_spill]] %s3387_s21  ;;  %s3487_s22 = sadd.s32 4294967295, %s3387_s21   ;;  %s3387_s21 = sphi %s3481_s21, %s27_s21  }
   0xb   : > { %p2881_p0 = scmp.ge.s32.totalorder %s3387_s21, 1  ;;  %p553_p1 = scmp.lt.s32.totalorder %s3387_s21, 3 }
   0xd   : > { %p554_p2 = pnand %p2881_p0, %p553_p1 }
   0xe   : > { %p638_p3 = scmp.lt.s32.totalorder (!%p554_p2), %s3487_s22, 1  ;;  %s4034_s2 = sld [smem:[#allocation9_spill]] (!%p554_p2) }
   0xf   : > { %557 = sbr.rel (%p554_p2) target bundleno = 3881 (0xf29), region = 84  ;;  %s4035_s3 = sld [smem:[#allocation10_spill]] (!%p554_p2) }
  0x10   : > { %s4036_s4 = sld [smem:[#allocation11_spill]] (!%p554_p2)  ;;  %p2891_p4 = scmp.ne.s32.totalorder (!%p554_p2), %s3487_s22, 0 }
  0x16   : > { %s3493_s23 = scalar_select %p638_p3, %s3487_s22, 1 }
  0x17   : > { %vm690_vm0 = vcmask (!%p2891_p4), 261120  }
  0x18   : > { %s2960_s24 = sshll.u32 %s3493_s23, 6  ;;  %s2884_s25 = sshll.u32 %s3493_s23, 2 }
  0x19   : > { %s3500_s28 = scalar_lea.vmem %s4034_s2, %s2960_s24  ;;  %s3505_s0 = scalar_lea.vmem %s4035_s3, %s2884_s25 }
  0x1a   : > { %s2961_s17 = sshll.u32 %s3493_s23, 4  ;;  %s668_s20 = scalar_lea.vmem %s4013_s9, %s3493_s23 }
  0x1b   : > { %s3515_s15 = scalar_lea.vmem %s4036_s4, %s2961_s17  ;;  %s3528_s2 = scalar_lea.vmem %s4012_s8, %s2961_s17 }
  0x1c   : > { %s2963_s16 = sshll.u32 %s3493_s23, 5  ;;  %s676_s26 = scalar_lea.vmem %s4015_s11, %s3493_s23 }
  0x1d   : > { %s3538_s4 = scalar_lea.vmem %s4014_s10, %s2963_s16  ;;  %s679_s25 = scalar_lea.vmem %s4016_s12, %s3493_s23 }
  0x1e   : > { %s682_s24 = scalar_lea.vmem %s4017_s13, %s3493_s23  ;;  %687 = sbr.rel (%p2891_p4) target bundleno = 39 (0x27), region = 88 }
  0x1f   : > { %s4037_s3 = sld [smem:[#allocation7_spill]] (!%p2891_p4) }
  0x25   : > { %v688_v0 = vld [vmem:[%s4037_s3] sm:$0xff]  ;;  %v689_v1 = vld [vmem:[%s4037_s3 + $0x8] sm:$0xff] }
  0x26   : > { %691 = vst.msk [vmem:[#allocation2] sm:$0xff] %vm690_vm0, %v688_v0  ;;  %692 = vst.msk [vmem:[#allocation2 + $0x8] sm:$0xff] %vm690_vm0, %v689_v1 }
  0x27 PF: > { %v3560_v2 = vld [vmem:[%s3500_s28] sm:$0xff]   ;;  %v3389_v3 = vmov 0.0   ;;  %v3565_v4 = vld [vmem:[%s3500_s28 + $0x10] sm:$0xff]   ;;  %v3569_v5 = vld [vmem:[%s3500_s28 + $0x8] sm:$0xff]   ;;  %vm3390_vm1 = vmmov 0   ;;  %vm759_vm2 = vcmask 261120   ;;  %s4039_s18 = scalar_lea.vmem %s4009_s5, %s3493_s23  ;;  %s4040_s16 = scalar_lea.vmem %s4010_s6, %s3493_s23 }
  0x28   : > { %3044 = vmatprep.subr.bf16.mxu0 %v3389_v3  ;;  %3052 = vmatprep.subr.bf16.mxu1 %v3389_v3  ;;  %v3576_v6 = vld [vmem:[%s3500_s28 + $0x18] sm:$0xff]   ;;  %v3587_v9 = vld [vmem:[%s3500_s28 + $0x20] sm:$0xff]   ;;  %v3592_v10 = vld [vmem:[%s3500_s28 + $0x30] sm:$0xff]   ;;  %vm966_vm3 = vcmask 64512   ;;  %s4038_s1 = sld [smem:[#allocation8_spill]]  ;;  %s3392_s14 = smov 112  }
  0x29   : > { %3045 = vmatpush3.bf16.msra.mxu0 %v3560_v2  ;;  %3048 = vmatprep.mubr.msk.bf16.mxu0 %vm3390_vm1, %v3389_v3  ;;  %v3596_v11 = vld [vmem:[%s3500_s28 + $0x28] sm:$0xff]   ;;  %v3600_v12 = vld [vmem:[%s3500_s28 + $0x38] sm:$0xff]   ;;  %v3622_v13 = vld [vmem:[%s3505_s0] ss:$0 sm:$0xff]  ;;  %s3391_s28 = smov 120   ;;  %vm1227_vm4 = vcmask 1043456  }
  0x2a   : > { %3053 = vmatpush3.bf16.msra.mxu1 %v3565_v4  ;;  %3046 = vmatprep.subr.bf16.mxu0 %v3389_v3  ;;  %v3625_v14 = vld [vmem:[%s3505_s0 + $0x1] ss:$0 sm:$0xff]  ;;  %v3636_v27 = vld [vmem:[%s3505_s0 + $0x2] ss:$0 sm:$0xff]  ;;  %v3639_v28 = vld [vmem:[%s3505_s0 + $0x3] ss:$0 sm:$0xff]  ;;  %s4041_s0 = scalar_lea.vmem %s4011_s7, %s3493_s23 }
  0x2b   : > { %3054 = vmatprep.subr.bf16.mxu1 %v3389_v3  ;;  %3056 = vmatprep.mubr.msk.bf16.mxu1 %vm3390_vm1, %v3389_v3  ;;  %vm2576_vm5 = vcmask 523264   ;;  %p2953_p5 = scmp.ne.s32.totalorder %s3487_s22, 1 }
  0x2d   : > { %v3579_v7 = vld [vmem:[#allocation2] sm:$0xff]  ;;  %3047 = vmatpush3.bf16.msra.mxu0 %v3569_v5 }
  0x2e   : > { %v722_v8 = vpack.c.bf16 %v3579_v7, %v3579_v7  ;;  %3055 = vmatpush3.bf16.msra.mxu1 %v3576_v6  ;;  %3060 = vmatprep.subr.bf16.mxu0 %v3389_v3  ;;  %v2912_v50 = vld [vmem:[%s4038_s1] ss:$0 sm:$0xff] }
  0x2f   : > { %3068 = vmatprep.subr.bf16.mxu1 %v3389_v3 }
  0x30   : > { %3049 = vmatmul.mubr.msk.bf16.vlgmr.msra.gmra.mrb[0].mxu0 %vm759_vm2, %v722_v8 }
  0x31   : > { %3057 = vmatmul.mubr.msk.bf16.vlgmr.msra.gmra.mrb[0].mxu1 %vm759_vm2, %v722_v8  ;;  %3061 = vmatpush3.bf16.msra.mxu0 %v3587_v9 }
  0x32   : > { %3069 = vmatpush3.bf16.msra.mxu1 %v3592_v10  ;;  %3062 = vmatprep.subr.bf16.mxu0 %v3389_v3 }
  0x33   : > { %3070 = vmatprep.subr.bf16.mxu1 %v3389_v3  ;;  %3064 = vmatprep.mubr.msk.bf16.mxu0 %vm3390_vm1, %v3389_v3 }
  0x34   : > { %3072 = vmatprep.mubr.msk.bf16.mxu1 %vm3390_vm1, %v3389_v3 }
  0x35   : > { %3063 = vmatpush3.bf16.msra.mxu0 %v3596_v11 }
  0x36   : > { %3071 = vmatpush3.bf16.msra.mxu1 %v3600_v12  ;;  %3076 = vmatprep.subr.bf16.mxu0 %v3389_v3 }
  0x37   : > { %3082 = vmatprep.subr.bf16.mxu1 %v3389_v3 }
  0x38   : > { %3065 = vmatmul.mubr.msk.bf16.vlgmr.msra.gmra.mrb[4].mxu0 %vm759_vm2, %v722_v8 }
  0x39   : > { %3073 = vmatmul.mubr.msk.bf16.vlgmr.msra.gmra.mrb[4].mxu1 %vm759_vm2, %v722_v8  ;;  %3078 = vmatprep.mubr.msk.bf16.mxu0 %vm3390_vm1, %v3389_v3 }
  0x3a   : > { %3084 = vmatprep.mubr.msk.bf16.mxu1 %vm3390_vm1, %v3389_v3 }
 0x103   : > { %v797_v15 = vpop.f32.mrb[0].mxu0 }
 0x104   : > { %v798_v16 = vadd.f32 %v3622_v13, %v797_v15  ;;  %v3050_v17 = vpop.f32.mrb[1].mxu0  ;;  %v849_v18 = vpop.f32.mrb[0].mxu1 }
 0x105   : > { %v850_v19 = vadd.f32 %v3625_v14, %v849_v18  ;;  %v800_v20 = vpop.f32.mrb[2].mxu0  ;;  %v3058_v21 = vpop.f32.mrb[1].mxu1 }
 0x106   : > { %v3629_v22 = vpack.c.bf16 %v798_v16, %v798_v16  ;;  %v3051_v23 = vpop.f32.mrb[3].mxu0  ;;  %v852_v24 = vpop.f32.mrb[2].mxu1 }
 0x107   : > { %v3059_v25 = vpop.f32.mrb[3].mxu1  ;;  %v3631_v26 = vpack.c.bf16 %v850_v19, %v850_v19 }
 0x108   : > { %964 = vrot.lane.b32.xlu0 %v3629_v22, %s3391_s28 }
 0x10b   : > { %v901_v29 = vpop.f32.mrb[4].mxu0 }
 0x10c   : > { %v902_v30 = vadd.f32 %v3636_v27, %v901_v29  ;;  %v953_v31 = vpop.f32.mrb[4].mxu1  ;;  %1014 = vrot.lane.b32.xlu0 %v3631_v26, %s3391_s28  ;;  %v3066_v32 = vpop.f32.mrb[5].mxu0 }
 0x10d   : > { %v954_v33 = vadd.f32 %v3639_v28, %v953_v31  ;;  %v904_v34 = vpop.f32.mrb[6].mxu0  ;;  %v3074_v35 = vpop.f32.mrb[5].mxu1 }
 0x10e   : > { %v3645_v36 = vpack.c.bf16 %v902_v30, %v902_v30  ;;  %v3067_v37 = vpop.f32.mrb[7].mxu0  ;;  %v956_v38 = vpop.f32.mrb[6].mxu1 }
 0x10f   : > { %v3075_v39 = vpop.f32.mrb[7].mxu1  ;;  %v3647_v40 = vpack.c.bf16 %v954_v33, %v954_v33 }
 0x110   : > { %1063 = vrot.lane.b32.xlu1 %v3645_v36, %s3391_s28 }
 0x114   : > { %1112 = vrot.lane.b32.xlu1 %v3647_v40, %s3391_s28 }
 0x17a   : > { %v965_v41 = vpop.permute.xlu0 %964 }
 0x17b   : > { %v971_v42 = vsel %vm966_vm3, %v965_v41, 0 }
 0x17c   : > { %3077 = vmatpush3.bf16.xpose.msra.mxu0 %v971_v42 }
 0x17d   : > { %3088 = vmatprep.subr.bf16.mxu0 %v3389_v3 }
 0x17e   : > { %v1015_v43 = vpop.permute.xlu0 %1014 }
 0x17f   : > { %v1020_v44 = vsel %vm966_vm3, %v1015_v43, 0 }
 0x180   : > { %3083 = vmatpush3.bf16.xpose.msra.mxu1 %v1020_v44 }
 0x181   : > { %3094 = vmatprep.subr.bf16.mxu1 %v3389_v3 }
 0x182   : > { %v1064_v45 = vpop.permute.xlu1 %1063 }
 0x183   : > { %v1069_v46 = vsel %vm966_vm3, %v1064_v45, 0  ;;  %3079 = vmatmul.mubr.msk.bf16.vlgmr.msra.gmra.mrb[8].mxu0 %vm966_vm3, %v3629_v22 }
 0x184   : > { %3089 = vmatpush3.bf16.xpose.msra.mxu0 %v1069_v46  ;;  %3090 = vmatprep.mubr.msk.bf16.mxu0 %vm3390_vm1, %v3389_v3 }
 0x185   : > { %3100 = vmatprep.subr.bf16.mxu0 %v3389_v3 }
 0x186   : > { %v1113_v47 = vpop.permute.xlu1 %1112 }
 0x187   : > { %v1118_v48 = vsel %vm966_vm3, %v1113_v47, 0  ;;  %3085 = vmatmul.mubr.msk.bf16.vlgmr.msra.gmra.mrb[8].mxu1 %vm966_vm3, %v3631_v26 }
 0x188   : > { %3095 = vmatpush3.bf16.xpose.msra.mxu1 %v1118_v48  ;;  %3096 = vmatprep.mubr.msk.bf16.mxu1 %vm3390_vm1, %v3389_v3 }
 0x189   : > { %3106 = vmatprep.subr.bf16.mxu1 %v3389_v3 }
 0x18b   : > { %3091 = vmatmul.mubr.msk.bf16.vlgmr.msra.gmra.mrb[12].mxu0 %vm966_vm3, %v3645_v36 }
 0x18c   : > { %3102 = vmatprep.mubr.msk.bf16.mxu0 %vm3390_vm1, %v3389_v3 }
 0x18f   : > { %3097 = vmatmul.mubr.msk.bf16.vlgmr.msra.gmra.mrb[12].mxu1 %vm966_vm3, %v3647_v40 }
 0x190   : > { %3108 = vmatprep.mubr.msk.bf16.mxu1 %vm3390_vm1, %v3389_v3 }
 0x256   : > { %v1007_v49 = vpop.f32.mrb[8].mxu0 }
 0x257   : > { %v1160_v51 = vmul.f32 0.35355338, %v1007_v49  ;;  %v3080_v52 = vpop.f32.mrb[9].mxu0 }
 0x258   : > { %v1010_v53 = vpop.f32.mrb[10].mxu0 }
 0x259   : > { %v3081_v54 = vpop.f32.mrb[11].mxu0  ;;  %v1170_v55 = vadd.f32 %v2912_v50, %v1160_v51 }
 0x25a   : > { %v1056_v56 = vpop.f32.mrb[8].mxu1 }
 0x25b   : > { %v1161_v57 = vmul.f32 0.35355338, %v1056_v56  ;;  %v3086_v58 = vpop.f32.mrb[9].mxu1  ;;  %v1174_v59 = vsel %vm966_vm3, %v1170_v55, -inf }
 0x25c   : > { %v1059_v60 = vpop.f32.mrb[10].mxu1  ;;  %1175 = vmax.xlane.f32.xlu0 %v1174_v59 }
 0x25d   : > { %v3087_v61 = vpop.f32.mrb[11].mxu1  ;;  %v1171_v62 = vadd.f32 %v2912_v50, %v1161_v57 }
 0x25e   : > { %v1105_v63 = vpop.f32.mrb[12].mxu0 }
 0x25f   : > { %v1162_v0 = vmul.f32 0.35355338, %v1105_v63  ;;  %v3092_v1 = vpop.f32.mrb[13].mxu0  ;;  %v1177_v8 = vsel %vm966_vm3, %v1171_v62, -inf }
 0x260   : > { %1178 = vmax.xlane.f32.xlu1 %v1177_v8  ;;  %v1108_v15 = vpop.f32.mrb[14].mxu0 }
 0x261   : > { %v3093_v16 = vpop.f32.mrb[15].mxu0  ;;  %v1172_v17 = vadd.f32 %v2912_v50, %v1162_v0 }
 0x262   : > { %v1154_v18 = vpop.f32.mrb[12].mxu1 }
 0x263   : > { %v1163_v19 = vmul.f32 0.35355338, %v1154_v18  ;;  %v3098_v20 = vpop.f32.mrb[13].mxu1  ;;  %v1180_v21 = vsel %vm966_vm3, %v1172_v17, -inf }
 0x264   : > { %v1157_v23 = vpop.f32.mrb[14].mxu1  ;;  %1181 = vmax.xlane.f32.xlu0 %v1180_v21  ;;  %v717_v20 = vld [vmem:[%s3515_s15] sm:$0xf] }
 0x265   : > { %v3099_v24 = vpop.f32.mrb[15].mxu1  ;;  %v1173_v25 = vadd.f32 %v2912_v50, %v1163_v19  ;;  %v3718_v21 = vsel %vm1227_vm4, %v717_v20, 0  ;;  %v718_v23 = vld [vmem:[%s3515_s15 + $0x4] sm:$0xf] }
 0x266   : > { %v3724_v24 = vsel %vm1227_vm4, %v718_v23, 0 }
 0x267   : > { %v1183_v29 = vsel %vm966_vm3, %v1173_v25, -inf }
 0x268   : > { %1184 = vmax.xlane.f32.xlu0 %v1183_v29 }
 0x271   : > { %1222 = vrot.lane.b32.xlu1 %v3629_v22, %s3392_s14 }
 0x2e9   : > { %v1176_v30 = vpop.xlane.xlu0 %1175 }
 0x2ea   : > { %v1186_v31 = vsub.f32 %v1170_v55, %v1176_v30 }
 0x2ec   : > { %v1190_v32 = vmul.f32 1.442695, %v1186_v31 }
 0x2ed   : > { %v1179_v33 = vpop.xlane.xlu1 %1178 }
 0x2ee   : > { %3307 = vpow2.f32 %v1190_v32  ;;  %v1187_v34 = vsub.f32 %v1171_v62, %v1179_v33 }
 0x2f0   : > { %v1192_v35 = vmul.f32 1.442695, %v1187_v34 }
 0x2f1   : > { %v1223_v37 = vpop.permute.xlu1 %1222  ;;  %v1182_v38 = vpop.xlane.xlu0 %1181 }
 0x2f2   : > { %3309 = vpow2.f32 %v1192_v35  ;;  %v1229_v39 = vsel %vm1227_vm4, %v1223_v37, 0  ;;  %v1188_v41 = vsub.f32 %v1172_v17, %v1182_v38  ;;  %v720_v35 = vld [vmem:[%s3515_s15 + $0xc] sm:$0xf] }
 0x2f3   : > { %3101 = vmatpush3.bf16.msra.mxu0 %v1229_v39 }
 0x2f4   : > { %v1194_v42 = vmul.f32 1.442695, %v1188_v41  ;;  %3112 = vmatprep.subr.bf16.mxu0 %v3389_v3  ;;  %v3739_v41 = vsel %vm1227_vm4, %v720_v35, 0 }
 0x2f5   : > { %v1185_v43 = vpop.xlane.xlu0 %1184 }
 0x2f6   : > { %3311 = vpow2.f32 %v1194_v42  ;;  %v1189_v22 = vsub.f32 %v1173_v25, %v1185_v43  ;;  %v719_v25 = vld [vmem:[%s3515_s15 + $0x8] sm:$0xf] }
 0x2f7   : > { %v3730_v32 = vsel %vm1227_vm4, %v719_v25, 0 }
 0x2f8   : > { %v3308_v44 = vpop.eup %3307  ;;  %v1196_v45 = vmul.f32 1.442695, %v1189_v22 }
 0x2f9   : > { %v1198_v46 = vsel %vm966_vm3, %v3308_v44, 0.0 }
 0x2fa   : > { %3313 = vpow2.f32 %v1196_v45  ;;  %1199 = vadd.xlane.f32.xlu1 %v1198_v46 }
 0x2fc   : > { %v3310_v47 = vpop.eup %3309 }
 0x2fd   : > { %v1201_v48 = vsel %vm966_vm3, %v3310_v47, 0.0 }
 0x2fe   : > { %1202 = vadd.xlane.f32.xlu0 %v1201_v48  ;;  %v3750_v48 = vld [vmem:[#allocation2 + $0x8] sm:$0xff] }
 0x300   : > { %v3312_v49 = vpop.eup %3311 }
 0x301   : > { %v1204_v50 = vsel %vm966_vm3, %v3312_v49, 0.0 }
 0x302   : > { %1205 = vadd.xlane.f32.xlu1 %v1204_v50 }
 0x304   : > { %v3314_v51 = vpop.eup %3313 }
 0x305   : > { %v1207_v52 = vsel %vm966_vm3, %v3314_v51, 0.0 }
 0x306   : > { %1208 = vadd.xlane.f32.xlu0 %v1207_v52 }
 0x313   : > { %1319 = vrot.lane.b32.xlu1 %v3645_v36, %s3392_s14 }
 0x317   : > { %1367 = vrot.lane.b32.xlu1 %v3647_v40, %s3392_s14 }
 0x31c   : > { %1271 = vrot.lane.b32.xlu0 %v3631_v26, %s3392_s14 }
 0x387   : > { %v1200_v53 = vpop.xlane.xlu1 %1199 }
 0x388   : > { %3315 = vrcp.f32 %v1200_v53  ;;  %v1610_v53 = vpack.c.bf16 %v3750_v48, %v3750_v48 }
 0x38b   : > { %v1203_v54 = vpop.xlane.xlu0 %1202 }
 0x38c   : > { %3317 = vrcp.f32 %v1203_v54 }
 0x38f   : > { %v1206_v55 = vpop.xlane.xlu1 %1205 }
 0x390   : > { %3319 = vrcp.f32 %v1206_v55 }
 0x392   : > { %v3316_v56 = vpop.eup %3315 }
 0x393   : > { %v1214_v57 = vmul.f32 %v3316_v56, %v3308_v44  ;;  %v1320_v58 = vpop.permute.xlu1 %1319  ;;  %v1209_v59 = vpop.xlane.xlu0 %1208 }
 0x394   : > { %3321 = vrcp.f32 %v1209_v59  ;;  %v1325_v62 = vsel %vm1227_vm4, %v1320_v58, 0 }
 0x395   : > { %v1218_v60 = vpack.c.bf16 %v1214_v57, %v1214_v57 }
 0x396   : > { %v3318_v61 = vpop.eup %3317 }
 0x397   : > { %v1215_v36 = vmul.f32 %v3318_v61, %v3310_v47  ;;  %3103 = vmatmul.mubr.msk.bf16.vlgmr.msra.gmra.mrb[16].mxu0 %vm966_vm3, %v1218_v60  ;;  %v1272_v40 = vpop.permute.xlu0 %1271  ;;  %v1368_v63 = vpop.permute.xlu1 %1367 }
 0x398   : > { %3113 = vmatpush3.bf16.msra.mxu0 %v1325_v62  ;;  %v1277_v26 = vsel %vm1227_vm4, %v1272_v40, 0  ;;  %3114 = vmatprep.mubr.msk.bf16.mxu0 %vm3390_vm1, %v3389_v3  ;;  %v1373_v15 = vsel %vm1227_vm4, %v1368_v63, 0 }
 0x399   : > { %3107 = vmatpush3.bf16.msra.mxu1 %v1277_v26  ;;  %v1219_v0 = vpack.c.bf16 %v1215_v36, %v1215_v36  ;;  %3124 = vmatprep.subr.bf16.mxu0 %v3389_v3 }
 0x39a   : > { %v3320_v1 = vpop.eup %3319  ;;  %3118 = vmatprep.subr.bf16.mxu1 %v3389_v3 }
 0x39b   : > { %v1216_v8 = vmul.f32 %v3320_v1, %v3312_v49 }
 0x39c   : > { %3109 = vmatmul.mubr.msk.bf16.vlgmr.msra.gmra.mrb[16].mxu1 %vm966_vm3, %v1219_v0 }
 0x39d   : > { %3119 = vmatpush3.bf16.msra.mxu1 %v1373_v15  ;;  %v1220_v16 = vpack.c.bf16 %v1216_v8, %v1216_v8  ;;  %3120 = vmatprep.mubr.msk.bf16.mxu1 %vm3390_vm1, %v3389_v3 }
 0x39e   : > { %v3322_v17 = vpop.eup %3321  ;;  %3130 = vmatprep.subr.bf16.mxu1 %v3389_v3 }
 0x39f   : > { %v1217_v18 = vmul.f32 %v3322_v17, %v3314_v51  ;;  %3115 = vmatmul.mubr.msk.bf16.vlgmr.msra.gmra.mrb[20].mxu0 %vm966_vm3, %v1220_v16 }
 0x3a0   : > { %3126 = vmatprep.mubr.msk.bf16.mxu0 %vm3390_vm1, %v3389_v3  ;;  %3125 = vmatpush3.bf16.msra.mxu0 %v3718_v21 }
 0x3a1   : > { %v1221_v19 = vpack.c.bf16 %v1217_v18, %v1217_v18  ;;  %3136 = vmatprep.subr.bf16.mxu0 %v3389_v3 }
 0x3a4   : > { %3121 = vmatmul.mubr.msk.bf16.vlgmr.msra.gmra.mrb[20].mxu1 %vm966_vm3, %v1221_v19 }
 0x3a5   : > { %3132 = vmatprep.mubr.msk.bf16.mxu1 %vm3390_vm1, %v3389_v3  ;;  %3131 = vmatpush3.bf16.msra.mxu1 %v3724_v24 }
 0x3a6   : > { %3142 = vmatprep.subr.bf16.mxu1 %v3389_v3 }
 0x46a   : > { %v1265_v29 = vpop.f32.mrb[16].mxu0 }
 0x46b   : > { %v1415_v30 = vpack.c.bf16 %v1265_v29, %v1265_v29  ;;  %v3104_v31 = vpop.f32.mrb[17].mxu0 }
 0x46c   : > { %v1268_v33 = vpop.f32.mrb[18].mxu0 }
 0x46d   : > { %v3105_v34 = vpop.f32.mrb[19].mxu0  ;;  %3127 = vmatmul.mubr.msk.bf16.vlgmr.msra.gmra.mrb[24].mxu0 %vm966_vm3, %v1415_v30 }
 0x46e   : > { %3137 = vmatpush3.bf16.msra.mxu0 %v3730_v32  ;;  %3138 = vmatprep.mubr.msk.bf16.mxu0 %vm3390_vm1, %v3389_v3 }
 0x46f   : > { %v1313_v37 = vpop.f32.mrb[16].mxu1  ;;  %3148 = vmatprep.subr.bf16.mxu0 %v3389_v3 }
 0x470   : > { %v1416_v38 = vpack.c.bf16 %v1313_v37, %v1313_v37  ;;  %v3110_v39 = vpop.f32.mrb[17].mxu1 }
 0x471   : > { %v1316_v42 = vpop.f32.mrb[18].mxu1 }
 0x472   : > { %v3111_v43 = vpop.f32.mrb[19].mxu1  ;;  %v1361_v22 = vpop.f32.mrb[20].mxu0  ;;  %3133 = vmatmul.mubr.msk.bf16.vlgmr.msra.gmra.mrb[24].mxu1 %vm966_vm3, %v1416_v38 }
 0x473   : > { %v1417_v44 = vpack.c.bf16 %v1361_v22, %v1361_v22  ;;  %v3116_v45 = vpop.f32.mrb[21].mxu0  ;;  %3143 = vmatpush3.bf16.msra.mxu1 %v3739_v41  ;;  %3144 = vmatprep.mubr.msk.bf16.mxu1 %vm3390_vm1, %v3389_v3 }
 0x474   : > { %v1364_v46 = vpop.f32.mrb[22].mxu0  ;;  %3156 = vmatprep.subr.bf16.mxu1 %v3389_v3 }
 0x475   : > { %v3117_v47 = vpop.f32.mrb[23].mxu0  ;;  %3139 = vmatmul.mubr.msk.bf16.vlgmr.msra.gmra.mrb[28].mxu0 %vm966_vm3, %v1417_v44 }
 0x476   : > { %3149 = vmatpush3.bf16.msra.mxu0 %v3560_v2  ;;  %3152 = vmatprep.mubr.msk.bf16.mxu0 %vm3390_vm1, %v3389_v3 }
 0x477   : > { %v1409_v49 = vpop.f32.mrb[20].mxu1  ;;  %3150 = vmatprep.subr.bf16.mxu0 %v3389_v3 }
 0x478   : > { %v1418_v50 = vpack.c.bf16 %v1409_v49, %v1409_v49  ;;  %v3122_v51 = vpop.f32.mrb[21].mxu1 }
 0x479   : > { %v1412_v52 = vpop.f32.mrb[22].mxu1 }
 0x47a   : > { %v3123_v54 = vpop.f32.mrb[23].mxu1  ;;  %3145 = vmatmul.mubr.msk.bf16.vlgmr.msra.gmra.mrb[28].mxu1 %vm966_vm3, %v1418_v50  ;;  %3151 = vmatpush3.bf16.msra.mxu0 %v3569_v5 }
 0x47b   : > { %3157 = vmatpush3.bf16.msra.mxu1 %v3565_v4  ;;  %3164 = vmatprep.subr.bf16.mxu0 %v3389_v3  ;;  %v2929_v54 = vld [vmem:[%s4038_s1 + $0x1] ss:$0 sm:$0xff] }
 0x47c   : > { %3158 = vmatprep.subr.bf16.mxu1 %v3389_v3  ;;  %3160 = vmatprep.mubr.msk.bf16.mxu1 %vm3390_vm1, %v3389_v3 }
 0x47d   : > { %3153 = vmatmul.mubr.msk.bf16.vlgmr.msra.gmra.mrb[32].mxu0 %vm759_vm2, %v1610_v53 }
 0x47e   : > { %3165 = vmatpush3.bf16.msra.mxu0 %v3587_v9  ;;  %3168 = vmatprep.mubr.msk.bf16.mxu0 %vm3390_vm1, %v3389_v3 }
 0x47f   : > { %3159 = vmatpush3.bf16.msra.mxu1 %v3576_v6  ;;  %3166 = vmatprep.subr.bf16.mxu0 %v3389_v3 }
 0x480   : > { %3172 = vmatprep.subr.bf16.mxu1 %v3389_v3 }
 0x482   : > { %3161 = vmatmul.mubr.msk.bf16.vlgmr.msra.gmra.mrb[32].mxu1 %vm759_vm2, %v1610_v53  ;;  %3167 = vmatpush3.bf16.msra.mxu0 %v3596_v11 }
 0x483   : > { %3173 = vmatpush3.bf16.msra.mxu1 %v3592_v10  ;;  %3176 = vmatprep.mubr.msk.bf16.mxu1 %vm3390_vm1, %v3389_v3 }
 0x484   : > { %3174 = vmatprep.subr.bf16.mxu1 %v3389_v3  ;;  %3180 = vmatprep.subr.bf16.mxu0 %v3389_v3 }
 0x485   : > { %3169 = vmatmul.mubr.msk.bf16.vlgmr.msra.gmra.mrb[36].mxu0 %vm759_vm2, %v1610_v53 }
 0x486   : > { %3182 = vmatprep.mubr.msk.bf16.mxu0 %vm3390_vm1, %v3389_v3 }
 0x487   : > { %3175 = vmatpush3.bf16.msra.mxu1 %v3600_v12 }
 0x488   : > { %3186 = vmatprep.subr.bf16.mxu1 %v3389_v3 }
 0x48a   : > { %3177 = vmatmul.mubr.msk.bf16.vlgmr.msra.gmra.mrb[36].mxu1 %vm759_vm2, %v1610_v53 }
 0x48b   : > { %3188 = vmatprep.mubr.msk.bf16.mxu1 %vm3390_vm1, %v3389_v3 }
 0x540   : > { %v1459_v2 = vpop.f32.mrb[24].mxu0 }
 0x541   : > { %v3128_v4 = vpop.f32.mrb[25].mxu0  ;;  %v1603_v10 = vsel %vm759_vm2, %v1459_v2, 0.0 }
 0x542   : > { %v1462_v5 = vpop.f32.mrb[26].mxu0 }
 0x543   : > { %v3129_v6 = vpop.f32.mrb[27].mxu0 }
 0x545   : > { %v1505_v9 = vpop.f32.mrb[24].mxu1 }
 0x546   : > { %v1604_v11 = vsel %vm759_vm2, %v1505_v9, 0.0  ;;  %v3134_v55 = vpop.f32.mrb[25].mxu1 }
 0x547   : > { %v1605_v56 = vadd.f32 %v1604_v11, %v1603_v10  ;;  %v1508_v57 = vpop.f32.mrb[26].mxu1 }
 0x548   : > { %v3135_v12 = vpop.f32.mrb[27].mxu1  ;;  %v1551_v58 = vpop.f32.mrb[28].mxu0 }
 0x549   : > { %v1606_v59 = vsel %vm759_vm2, %v1551_v58, 0.0  ;;  %v3140_v60 = vpop.f32.mrb[29].mxu0 }
 0x54a   : > { %v1607_v61 = vadd.f32 %v1606_v59, %v1605_v56  ;;  %v1554_v36 = vpop.f32.mrb[30].mxu0 }
 0x54b   : > { %v3141_v62 = vpop.f32.mrb[31].mxu0 }
 0x54d   : > { %v1597_v40 = vpop.f32.mrb[28].mxu1 }
 0x54e   : > { %v1608_v26 = vsel %vm759_vm2, %v1597_v40, 0.0  ;;  %v3146_v63 = vpop.f32.mrb[29].mxu1 }
 0x54f   : > { %v3788_v0 = vadd.f32 %v1608_v26, %v1607_v61  ;;  %v1600_v1 = vpop.f32.mrb[30].mxu1 }
 0x550   : > { %v3147_v8 = vpop.f32.mrb[31].mxu1  ;;  %v1648_v15 = vpop.f32.mrb[32].mxu0 }
 0x551   : > { %v1649_v16 = vadd.f32 %v3622_v13, %v1648_v15  ;;  %v3154_v17 = vpop.f32.mrb[33].mxu0 }
 0x552   : > { %v1651_v18 = vpop.f32.mrb[34].mxu0 }
 0x553   : > { %v3791_v19 = vpack.c.bf16 %v1649_v16, %v1649_v16  ;;  %v3155_v20 = vpop.f32.mrb[35].mxu0 }
 0x555   : > { %v1688_v23 = vpop.f32.mrb[32].mxu1  ;;  %1779 = vrot.lane.b32.xlu0 %v3791_v19, %s3391_s28 }
 0x556   : > { %v1689_v25 = vadd.f32 %v3625_v14, %v1688_v23  ;;  %v3162_v29 = vpop.f32.mrb[33].mxu1 }
 0x557   : > { %v1691_v30 = vpop.f32.mrb[34].mxu1 }
 0x558   : > { %v3796_v31 = vpack.c.bf16 %v1689_v25, %v1689_v25  ;;  %v3163_v33 = vpop.f32.mrb[35].mxu1  ;;  %v1728_v34 = vpop.f32.mrb[36].mxu0 }
 0x559   : > { %v1729_v35 = vadd.f32 %v3636_v27, %v1728_v34  ;;  %v3170_v13 = vpop.f32.mrb[37].mxu0 }
 0x55a   : > { %1828 = vrot.lane.b32.xlu1 %v3796_v31, %s3391_s28  ;;  %v1731_v37 = vpop.f32.mrb[38].mxu0 }
 0x55b   : > { %v3801_v38 = vpack.c.bf16 %v1729_v35, %v1729_v35  ;;  %v3171_v39 = vpop.f32.mrb[39].mxu0 }
 0x55d   : > { %v1768_v42 = vpop.f32.mrb[36].mxu1  ;;  %1877 = vrot.lane.b32.xlu0 %v3801_v38, %s3391_s28 }
 0x55e   : > { %v1769_v14 = vadd.f32 %v3639_v28, %v1768_v42  ;;  %v3178_v43 = vpop.f32.mrb[37].mxu1 }
 0x55f   : > { %v1771_v22 = vpop.f32.mrb[38].mxu1 }
 0x560   : > { %v3806_v44 = vpack.c.bf16 %v1769_v14, %v1769_v14  ;;  %v3179_v45 = vpop.f32.mrb[39].mxu1 }
 0x562   : > { %1926 = vrot.lane.b32.xlu1 %v3806_v44, %s3391_s28 }
 0x5c7   : > { %v1780_v27 = vpop.permute.xlu0 %1779 }
 0x5c8   : > { %v1785_v46 = vsel %vm966_vm3, %v1780_v27, 0 }
 0x5c9   : > { %3181 = vmatpush3.bf16.xpose.msra.mxu0 %v1785_v46 }
 0x5ca   : > { %3192 = vmatprep.subr.bf16.mxu0 %v3389_v3 }
 0x5cc   : > { %v1829_v47 = vpop.permute.xlu1 %1828 }
 0x5cd   : > { %v1834_v49 = vsel %vm966_vm3, %v1829_v47, 0 }
 0x5ce   : > { %3187 = vmatpush3.bf16.xpose.msra.mxu1 %v1834_v49 }
 0x5cf   : > { %v1878_v50 = vpop.permute.xlu0 %1877  ;;  %3198 = vmatprep.subr.bf16.mxu1 %v3389_v3 }
 0x5d0   : > { %v1883_v28 = vsel %vm966_vm3, %v1878_v50, 0  ;;  %3183 = vmatmul.mubr.msk.bf16.vlgmr.msra.gmra.mrb[40].mxu0 %vm966_vm3, %v3791_v19 }
 0x5d1   : > { %3193 = vmatpush3.bf16.xpose.msra.mxu0 %v1883_v28  ;;  %3194 = vmatprep.mubr.msk.bf16.mxu0 %vm3390_vm1, %v3389_v3 }
 0x5d2   : > { %3204 = vmatprep.subr.bf16.mxu0 %v3389_v3 }
 0x5d4   : > { %v1927_v51 = vpop.permute.xlu1 %1926 }
 0x5d5   : > { %v1932_v52 = vsel %vm966_vm3, %v1927_v51, 0  ;;  %3189 = vmatmul.mubr.msk.bf16.vlgmr.msra.gmra.mrb[40].mxu1 %vm966_vm3, %v3796_v31  ;;  %v3860_v51 = vld [vmem:[%s4039_s18] ss:$0 sm:$0xff] }
 0x5d6   : > { %3199 = vmatpush3.bf16.xpose.msra.mxu1 %v1932_v52  ;;  %3200 = vmatprep.mubr.msk.bf16.mxu1 %vm3390_vm1, %v3389_v3  ;;  %v2417_v52 = vadd.f32 %v3860_v51, %v3788_v0 }
 0x5d7   : > { %3210 = vmatprep.subr.bf16.mxu1 %v3389_v3 }
 0x5d8   : > { %3195 = vmatmul.mubr.msk.bf16.vlgmr.msra.gmra.mrb[44].mxu0 %vm966_vm3, %v3801_v38 }
 0x5d9   : > { %3206 = vmatprep.mubr.msk.bf16.mxu0 %vm3390_vm1, %v3389_v3 }
 0x5dd   : > { %3201 = vmatmul.mubr.msk.bf16.vlgmr.msra.gmra.mrb[44].mxu1 %vm966_vm3, %v3806_v44 }
 0x5de   : > { %3212 = vmatprep.mubr.msk.bf16.mxu1 %vm3390_vm1, %v3389_v3 }
 0x6a3   : > { %v1821_v53 = vpop.f32.mrb[40].mxu0 }
 0x6a4   : > { %v1974_v2 = vmul.f32 0.35355338, %v1821_v53  ;;  %v3184_v4 = vpop.f32.mrb[41].mxu0  ;;  %v2419_v53 = vadd.f32 %v2417_v52, %v3579_v7 }
 0x6a5   : > { %v1824_v5 = vpop.f32.mrb[42].mxu0 }
 0x6a6   : > { %v3185_v6 = vpop.f32.mrb[43].mxu0  ;;  %v1984_v9 = vadd.f32 %v2929_v54, %v1974_v2 }
 0x6a8   : > { %v1870_v10 = vpop.f32.mrb[40].mxu1  ;;  %v1988_v11 = vsel %vm966_vm3, %v1984_v9, -inf }
 0x6a9   : > { %v1975_v55 = vmul.f32 0.35355338, %v1870_v10  ;;  %v3190_v56 = vpop.f32.mrb[41].mxu1  ;;  %1989 = vmax.xlane.f32.xlu0 %v1988_v11 }
 0x6aa   : > { %v1873_v57 = vpop.f32.mrb[42].mxu1 }
 0x6ab   : > { %v3191_v12 = vpop.f32.mrb[43].mxu1  ;;  %v1919_v58 = vpop.f32.mrb[44].mxu0  ;;  %v1985_v59 = vadd.f32 %v2929_v54, %v1975_v55 }
 0x6ac   : > { %v1976_v60 = vmul.f32 0.35355338, %v1919_v58  ;;  %v3196_v61 = vpop.f32.mrb[45].mxu0 }
 0x6ad   : > { %v1922_v36 = vpop.f32.mrb[46].mxu0  ;;  %v1991_v62 = vsel %vm966_vm3, %v1985_v59, -inf }
 0x6ae   : > { %1992 = vmax.xlane.f32.xlu1 %v1991_v62  ;;  %v3197_v40 = vpop.f32.mrb[47].mxu0  ;;  %v1986_v26 = vadd.f32 %v2929_v54, %v1976_v60 }
 0x6b0   : > { %v1968_v63 = vpop.f32.mrb[44].mxu1  ;;  %v1994_v1 = vsel %vm966_vm3, %v1986_v26, -inf }
 0x6b1   : > { %v1977_v8 = vmul.f32 0.35355338, %v1968_v63  ;;  %v3202_v15 = vpop.f32.mrb[45].mxu1  ;;  %1995 = vmax.xlane.f32.xlu0 %v1994_v1 }
 0x6b2   : > { %v1971_v16 = vpop.f32.mrb[46].mxu1 }
 0x6b3   : > { %v3203_v17 = vpop.f32.mrb[47].mxu1  ;;  %v1987_v18 = vadd.f32 %v2929_v54, %v1977_v8  ;;  %v2423_v54 = vsel %vm759_vm2, %v2419_v53, 0.0 }
 0x6b5   : > { %v1997_v20 = vsel %vm966_vm3, %v1987_v18, -inf }
 0x6b6   : > { %1998 = vmax.xlane.f32.xlu0 %v1997_v20 }
 0x6bf   : > { %2036 = vrot.lane.b32.xlu1 %v3791_v19, %s3392_s14 }
 0x736   : > { %v1990_v23 = vpop.xlane.xlu0 %1989 }
 0x737   : > { %v2000_v25 = vsub.f32 %v1984_v9, %v1990_v23 }
 0x739   : > { %v2004_v29 = vmul.f32 1.442695, %v2000_v25 }
 0x73b   : > { %3323 = vpow2.f32 %v2004_v29  ;;  %v1993_v30 = vpop.xlane.xlu1 %1992 }
 0x73c   : > { %v2001_v33 = vsub.f32 %v1985_v59, %v1993_v30 }
 0x73e   : > { %v2006_v34 = vmul.f32 1.442695, %v2001_v33  ;;  %v1996_v35 = vpop.xlane.xlu0 %1995 }
 0x73f   : > { %v2002_v13 = vsub.f32 %v1986_v26, %v1996_v35  ;;  %v2037_v37 = vpop.permute.xlu1 %2036 }
 0x740   : > { %3325 = vpow2.f32 %v2006_v34  ;;  %v2042_v39 = vsel %vm1227_vm4, %v2037_v37, 0 }
 0x741   : > { %v2008_v42 = vmul.f32 1.442695, %v2002_v13  ;;  %3205 = vmatpush3.bf16.msra.mxu0 %v2042_v39 }
 0x742   : > { %3216 = vmatprep.subr.bf16.mxu0 %v3389_v3 }
 0x743   : > { %3327 = vpow2.f32 %v2008_v42  ;;  %v1999_v14 = vpop.xlane.xlu0 %1998 }
 0x744   : > { %v2003_v19 = vsub.f32 %v1987_v18, %v1999_v14 }
 0x745   : > { %v3324_v43 = vpop.eup %3323 }
 0x746   : > { %v2010_v22 = vmul.f32 1.442695, %v2003_v19  ;;  %v2012_v45 = vsel %vm966_vm3, %v3324_v43, 0.0 }
 0x747   : > { %2013 = vadd.xlane.f32.xlu1 %v2012_v45 }
 0x748   : > { %3329 = vpow2.f32 %v2010_v22 }
 0x74a   : > { %v3326_v27 = vpop.eup %3325 }
 0x74b   : > { %v2015_v46 = vsel %vm966_vm3, %v3326_v27, 0.0 }
 0x74c   : > { %2016 = vadd.xlane.f32.xlu0 %v2015_v46 }
 0x74d   : > { %v3328_v47 = vpop.eup %3327 }
 0x74e   : > { %v2018_v49 = vsel %vm966_vm3, %v3328_v47, 0.0 }
 0x74f   : > { %2019 = vadd.xlane.f32.xlu1 %v2018_v49 }
 0x752   : > { %v3330_v50 = vpop.eup %3329 }
 0x753   : > { %v2021_v28 = vsel %vm966_vm3, %v3330_v50, 0.0 }
 0x754   : > { %2022 = vadd.xlane.f32.xlu0 %v2021_v28 }
 0x760   : > { %2132 = vrot.lane.b32.xlu1 %v3801_v38, %s3392_s14 }
 0x764   : > { %2180 = vrot.lane.b32.xlu1 %v3806_v44, %s3392_s14 }
 0x76a   : > { %2084 = vrot.lane.b32.xlu0 %v3796_v31, %s3392_s14 }
 0x789   : > { %2424 = vadd.xlane.f32.xlu0 %v2423_v54 }
 0x7d4   : > { %v2014_v38 = vpop.xlane.xlu1 %2013 }
 0x7d5   : > { %3331 = vrcp.f32 %v2014_v38 }
 0x7d9   : > { %v2017_v44 = vpop.xlane.xlu0 %2016 }
 0x7da   : > { %3333 = vrcp.f32 %v2017_v44 }
 0x7dc   : > { %v2020_v2 = vpop.xlane.xlu1 %2019 }
 0x7dd   : > { %3335 = vrcp.f32 %v2020_v2 }
 0x7df   : > { %v3332_v31 = vpop.eup %3331 }
 0x7e0   : > { %v2028_v4 = vmul.f32 %v3332_v31, %v3324_v43  ;;  %v2133_v5 = vpop.permute.xlu1 %2132 }
 0x7e1   : > { %v2023_v6 = vpop.xlane.xlu0 %2022  ;;  %v2138_v0 = vsel %vm1227_vm4, %v2133_v5, 0 }
 0x7e2   : > { %3337 = vrcp.f32 %v2023_v6  ;;  %v2032_v9 = vpack.c.bf16 %v2028_v4, %v2028_v4 }
 0x7e4   : > { %v3334_v10 = vpop.eup %3333  ;;  %3207 = vmatmul.mubr.msk.bf16.vlgmr.msra.gmra.mrb[48].mxu0 %vm966_vm3, %v2032_v9  ;;  %v2181_v57 = vpop.permute.xlu1 %2180 }
 0x7e5   : > { %v2029_v7 = vmul.f32 %v3334_v10, %v3326_v27  ;;  %3217 = vmatpush3.bf16.msra.mxu0 %v2138_v0  ;;  %v2085_v11 = vpop.permute.xlu0 %2084  ;;  %3218 = vmatprep.mubr.msk.bf16.mxu0 %vm3390_vm1, %v3389_v3  ;;  %v2186_v59 = vsel %vm1227_vm4, %v2181_v57, 0 }
 0x7e6   : > { %v2090_v55 = vsel %vm1227_vm4, %v2085_v11, 0  ;;  %3228 = vmatprep.subr.bf16.mxu0 %v3389_v3 }
 0x7e7   : > { %v3336_v56 = vpop.eup %3335  ;;  %3211 = vmatpush3.bf16.msra.mxu1 %v2090_v55  ;;  %v2033_v12 = vpack.c.bf16 %v2029_v7, %v2029_v7 }
 0x7e8   : > { %v2030_v58 = vmul.f32 %v3336_v56, %v3328_v47  ;;  %3222 = vmatprep.subr.bf16.mxu1 %v3389_v3 }
 0x7ea   : > { %3213 = vmatmul.mubr.msk.bf16.vlgmr.msra.gmra.mrb[48].mxu1 %vm966_vm3, %v2033_v12  ;;  %v2034_v60 = vpack.c.bf16 %v2030_v58, %v2030_v58 }
 0x7eb   : > { %3223 = vmatpush3.bf16.msra.mxu1 %v2186_v59  ;;  %3224 = vmatprep.mubr.msk.bf16.mxu1 %vm3390_vm1, %v3389_v3  ;;  %v3301_v59 = vld [vmem:[%s3528_s2] sm:$0xff]  }
 0x7ec   : > { %v3338_v61 = vpop.eup %3337  ;;  %3219 = vmatmul.mubr.msk.bf16.vlgmr.msra.gmra.mrb[52].mxu0 %vm966_vm3, %v2034_v60  ;;  %3234 = vmatprep.subr.bf16.mxu1 %v3389_v3  ;;  %v3302_v60 = vld [vmem:[%s3528_s2 + $0x8] sm:$0xff]   ;;  %s4043_s2 = sld [smem:[#allocation13_spill]] (!%p2953_p5) }
 0x7ed   : > { %v2031_v36 = vmul.f32 %v3338_v61, %v3330_v50  ;;  %3229 = vmatpush3.bf16.msra.mxu0 %v3718_v21  ;;  %3230 = vmatprep.mubr.msk.bf16.mxu0 %vm3390_vm1, %v3389_v3 }
 0x7ee   : > { %3240 = vmatprep.subr.bf16.mxu0 %v3389_v3 }
 0x7ef   : > { %v2035_v62 = vpack.c.bf16 %v2031_v36, %v2031_v36 }
 0x7f2   : > { %3225 = vmatmul.mubr.msk.bf16.vlgmr.msra.gmra.mrb[52].mxu1 %vm966_vm3, %v2035_v62 }
 0x7f3   : > { %3235 = vmatpush3.bf16.msra.mxu1 %v3724_v24  ;;  %3236 = vmatprep.mubr.msk.bf16.mxu1 %vm3390_vm1, %v3389_v3 }
 0x7f4   : > { %3246 = vmatprep.subr.bf16.mxu1 %v3389_v3 }
 0x816   : > { %v2425_v40 = vpop.xlane.xlu0 %2424 }
 0x817   : > { %v2430_v26 = vmul.f32 0.03125, %v2425_v40 }
 0x819   : > { %v3888_v63 = vsub.f32 %v2419_v53, %v2430_v26 }
 0x81b   : > { %v2434_v21 = vmul.f32 %v3888_v63, %v3888_v63 }
 0x81d   : > { %v2436_v1 = vsel %vm759_vm2, %v2434_v21, 0.0 }
 0x81e   : > { %2437 = vadd.xlane.f32.xlu0 %v2436_v1 }
 0x8ab   : > { %v2438_v61 = vpop.xlane.xlu0 %2437 }
 0x8ac   : > { %v2442_v36 = vmul.f32 0.03125, %v2438_v61 }
 0x8ae   : > { %v2444_v62 = vadd.f32 1e-06, %v2442_v36 }
 0x8b0   : > { %3339 = vrsqrt.f32 %v2444_v62 }
 0x8b7   : > { %v2078_v8 = vpop.f32.mrb[48].mxu0 }
 0x8b8   : > { %v2228_v15 = vpack.c.bf16 %v2078_v8, %v2078_v8  ;;  %v3208_v16 = vpop.f32.mrb[49].mxu0 }
 0x8b9   : > { %v2081_v17 = vpop.f32.mrb[50].mxu0 }
 0x8ba   : > { %v3209_v24 = vpop.f32.mrb[51].mxu0  ;;  %3231 = vmatmul.mubr.msk.bf16.vlgmr.msra.gmra.mrb[56].mxu0 %vm966_vm3, %v2228_v15  ;;  %v3340_v1 = vpop.eup %3339  ;;  %v2939_v15 = vld [vmem:[%s4040_s16] ss:$0 sm:$0xff] }
 0x8bb   : > { %3241 = vmatpush3.bf16.msra.mxu0 %v3730_v32  ;;  %3242 = vmatprep.mubr.msk.bf16.mxu0 %vm3390_vm1, %v3389_v3  ;;  %v2448_v8 = vmul.f32 %v3340_v1, %v3888_v63  ;;  %v3305_v63 = vld [vmem:[%s3538_s4 + $0x10] sm:$0xff]  }
 0x8bc   : > { %3252 = vmatprep.subr.bf16.mxu0 %v3389_v3 }
 0x8bd   : > { %v2126_v18 = vpop.f32.mrb[48].mxu1  ;;  %v2456_v17 = vmul.f32 %v2939_v15, %v2448_v8 }
 0x8be   : > { %v2229_v20 = vpack.c.bf16 %v2126_v18, %v2126_v18  ;;  %v3214_v23 = vpop.f32.mrb[49].mxu1  ;;  %v2940_v18 = vld [vmem:[%s4041_s0] ss:$0 sm:$0xff] }
 0x8bf   : > { %v2129_v25 = vpop.f32.mrb[50].mxu1  ;;  %v2174_v29 = vpop.f32.mrb[52].mxu0  ;;  %v2464_v23 = vadd.f32 %v2940_v18, %v2456_v17 }
 0x8c0   : > { %v2230_v30 = vpack.c.bf16 %v2174_v29, %v2174_v29  ;;  %v3215_v33 = vpop.f32.mrb[51].mxu1  ;;  %v3220_v34 = vpop.f32.mrb[53].mxu0  ;;  %3237 = vmatmul.mubr.msk.bf16.vlgmr.msra.gmra.mrb[56].mxu1 %vm966_vm3, %v2229_v20 }
 0x8c1   : > { %v2177_v35 = vpop.f32.mrb[54].mxu0  ;;  %3247 = vmatpush3.bf16.msra.mxu1 %v3739_v41  ;;  %3248 = vmatprep.mubr.msk.bf16.mxu1 %vm3390_vm1, %v3389_v3  ;;  %v2941_v33 = vld [vmem:[%s668_s20] ss:$0 sm:$0xff] }
 0x8c2   : > { %v3221_v32 = vpop.f32.mrb[55].mxu0  ;;  %3243 = vmatmul.mubr.msk.bf16.vlgmr.msra.gmra.mrb[60].mxu0 %vm966_vm3, %v2230_v30  ;;  %3260 = vmatprep.subr.bf16.mxu1 %v3389_v3  ;;  %v3306_v30 = vld [vmem:[%s3538_s4 + $0x18] sm:$0xff]  }
 0x8c3   : > { %3256 = vmatprep.mubr.msk.bf16.mxu0 %vm3390_vm1, %v3389_v3  ;;  %3253 = vmatpush3.bf16.msra.mxu0 %v3301_v59  ;;  %v2952_v59 = vld [vmem:[%s682_s24] ss:$0 sm:$0xff] }
 0x8c4   : > { %3254 = vmatprep.subr.bf16.mxu0 %v3389_v3 }
 0x8c5   : > { %v2222_v13 = vpop.f32.mrb[52].mxu1 }
 0x8c6   : > { %v2231_v37 = vpack.c.bf16 %v2222_v13, %v2222_v13  ;;  %v3226_v39 = vpop.f32.mrb[53].mxu1 }
 0x8c7   : > { %v2225_v42 = vpop.f32.mrb[54].mxu1  ;;  %3255 = vmatpush3.bf16.msra.mxu0 %v3302_v60 }
 0x8c8   : > { %v3227_v14 = vpop.f32.mrb[55].mxu1  ;;  %3249 = vmatmul.mubr.msk.bf16.vlgmr.msra.gmra.mrb[60].mxu1 %vm966_vm3, %v2231_v37 }
 0x8c9   : > { %3268 = vmatprep.mubr.msk.bf16.mxu1 %vm3390_vm1, %v3389_v3 }
 0x98d   : > { %v2269_v41 = vpop.f32.mrb[56].mxu0 }
 0x98e   : > { %v3232_v19 = vpop.f32.mrb[57].mxu0  ;;  %v2404_v27 = vsel %vm759_vm2, %v2269_v41, 0.0 }
 0x98f   : > { %v2272_v43 = vpop.f32.mrb[58].mxu0 }
 0x990   : > { %v3233_v22 = vpop.f32.mrb[59].mxu0 }
 0x993   : > { %v2312_v45 = vpop.f32.mrb[56].mxu1 }
 0x994   : > { %v2405_v46 = vsel %vm759_vm2, %v2312_v45, 0.0  ;;  %v3238_v47 = vpop.f32.mrb[57].mxu1 }
 0x995   : > { %v2406_v49 = vadd.f32 %v2405_v46, %v2404_v27  ;;  %v2315_v50 = vpop.f32.mrb[58].mxu1  ;;  %v2355_v28 = vpop.f32.mrb[60].mxu0 }
 0x996   : > { %v2407_v52 = vsel %vm759_vm2, %v2355_v28, 0.0  ;;  %v3239_v53 = vpop.f32.mrb[59].mxu1  ;;  %v3244_v54 = vpop.f32.mrb[61].mxu0 }
 0x997   : > { %v2408_v38 = vadd.f32 %v2407_v52, %v2406_v49  ;;  %v2358_v44 = vpop.f32.mrb[62].mxu0 }
 0x998   : > { %v3245_v2 = vpop.f32.mrb[63].mxu0 }
 0x99b   : > { %v2398_v31 = vpop.f32.mrb[60].mxu1 }
 0x99c   : > { %v2409_v4 = vsel %vm759_vm2, %v2398_v31, 0.0  ;;  %v3250_v5 = vpop.f32.mrb[61].mxu1 }
 0x99d   : > { %v2410_v6 = vadd.f32 %v2409_v4, %v2408_v38  ;;  %v2401_v9 = vpop.f32.mrb[62].mxu1 }
 0x99e   : > { %v3251_v10 = vpop.f32.mrb[63].mxu1 }
 0x99f   : > { %v2418_v0 = vadd.f32 %v3860_v51, %v2410_v6  ;;  %v3303_v51 = vld [vmem:[%s3538_s4] sm:$0xff]  }
 0x9a0   : > { %3261 = vmatpush3.bf16.msra.mxu1 %v3303_v51 }
 0x9a1   : > { %v2420_v7 = vadd.f32 %v2418_v0, %v3750_v48  ;;  %v3304_v48 = vld [vmem:[%s3538_s4 + $0x8] sm:$0xff]   ;;  %3262 = vmatprep.subr.bf16.mxu1 %v3389_v3 }
 0x9a3   : > { %v2426_v11 = vsel %vm759_vm2, %v2420_v7, 0.0 }
 0x9a4   : > { %2427 = vadd.xlane.f32.xlu1 %v2426_v11  ;;  %3263 = vmatpush3.bf16.msra.mxu1 %v3304_v48 }
 0x9a5   : > { %3264 = vmatprep.subr.bf16.mxu1 %v3389_v3 }
 0x9a8   : > { %3265 = vmatpush3.bf16.msra.mxu1 %v3305_v63 }
 0x9a9   : > { %3266 = vmatprep.subr.bf16.mxu1 %v3389_v3  ;;  %v2945_v3 = vld [vmem:[%s676_s26] ss:$0 sm:$0xff] }
 0x9ac   : > { %3267 = vmatpush3.bf16.msra.mxu1 %v3306_v30 }
 0xa31   : > { %v2428_v55 = vpop.xlane.xlu1 %2427 }
 0xa32   : > { %v2431_v56 = vmul.f32 0.03125, %v2428_v55 }
 0xa34   : > { %v2433_v57 = vsub.f32 %v2420_v7, %v2431_v56 }
 0xa36   : > { %v2435_v12 = vmul.f32 %v2433_v57, %v2433_v57 }
 0xa38   : > { %v2439_v58 = vsel %vm759_vm2, %v2435_v12, 0.0 }
 0xa39   : > { %2440 = vadd.xlane.f32.xlu0 %v2439_v58 }
 0xac6   : > { %v2441_v40 = vpop.xlane.xlu0 %2440 }
 0xac7   : > { %v2443_v26 = vmul.f32 0.03125, %v2441_v40 }
 0xac9   : > { %v2445_v21 = vadd.f32 1e-06, %v2443_v26 }
 0xacb   : > { %3341 = vrsqrt.f32 %v2445_v21 }
 0xad5   : > { %v3342_v16 = vpop.eup %3341 }
 0xad6   : > { %v2449_v24 = vmul.f32 %v3342_v16, %v2433_v57  ;;  %v2951_v57 = vld [vmem:[%s679_s25] ss:$0 sm:$0xff]  ;;  %s4042_s25 = sld [smem:[#allocation12_spill]] (!%p2953_p5) }
 0xad8   : > { %v2457_v20 = vmul.f32 %v2939_v15, %v2449_v24 }
 0xada   : > { %v2465_v25 = vadd.f32 %v2940_v18, %v2457_v20 }
 0xadc   : > { %v2466_v29 = vpack.c.bf16 %v2465_v25, %v2464_v23 }
 0xade   : > { %3257 = vmatmul.mubr.msk.bf16.vlgmr.msra.gmra.mrb[64].mxu0 %vm759_vm2, %v2466_v29 }
 0xbb1   : > { %v2527_v34 = vpop.f32.mrb[64].mxu0 }
 0xbb2   : > { %v2528_v35 = vadd.f32 %v2941_v33, %v2527_v34  ;;  %v3258_v32 = vpop.f32.mrb[65].mxu0 }
 0xbb3   : > { %v2530_v13 = vpop.f32.mrb[66].mxu0 }
 0xbb4   : > { %v2531_v37 = vadd.f32 %v2941_v33, %v2530_v13  ;;  %v3259_v39 = vpop.f32.mrb[67].mxu0  ;;  %v2534_v42 = vmax.f32 %v2528_v35, 0.0  ;;  %v2954_v35 = vld [vmem:[%s4042_s25] ss:$0 sm:$0xff] (!%p2953_p5) }
 0xbb5   : > { %v2955_v13 = vld [vmem:[%s4043_s2] ss:$0 sm:$0xff] (!%p2953_p5) }
 0xbb6   : > { %v2535_v14 = vmax.f32 %v2531_v37, 0.0 }
 0xbb8   : > { %v2536_v41 = vpack.c.bf16 %v2535_v14, %v2534_v42 }
 0xbba   : > { %3269 = vmatmul.mubr.msk.bf16.vlgmr.msra.gmra.mrb[64].mxu1 %vm2576_vm5, %v2536_v41 }
 0xc8d   : > { %v2614_v19 = vpop.f32.mrb[64].mxu1 }
 0xc8e   : > { %v2615_v43 = vadd.f32 %v2945_v3, %v2614_v19  ;;  %v3270_v22 = vpop.f32.mrb[65].mxu1 }
 0xc8f   : > { %v2617_v45 = vpop.f32.mrb[66].mxu1 }
 0xc90   : > { %v2618_v27 = vadd.f32 %v2945_v3, %v2617_v45  ;;  %v3271_v46 = vpop.f32.mrb[67].mxu1  ;;  %v2621_v47 = vadd.f32 %v2615_v43, %v2464_v23 }
 0xc92   : > { %v2625_v49 = vsel %vm759_vm2, %v2621_v47, 0.0  ;;  %v2622_v50 = vadd.f32 %v2618_v27, %v2465_v25 }
 0xc93   : > { %2626 = vadd.xlane.f32.xlu1 %v2625_v49 }
 0xc94   : > { %v2628_v28 = vsel %vm759_vm2, %v2622_v50, 0.0 }
 0xc95   : > { %2629 = vadd.xlane.f32.xlu0 %v2628_v28 }
 0xd20   : > { %v2627_v52 = vpop.xlane.xlu1 %2626 }
 0xd21   : > { %v2631_v53 = vmul.f32 0.03125, %v2627_v52 }
 0xd22   : > { %v2630_v54 = vpop.xlane.xlu0 %2629 }
 0xd23   : > { %v2633_v38 = vsub.f32 %v2621_v47, %v2631_v53  ;;  %v2632_v44 = vmul.f32 0.03125, %v2630_v54 }
 0xd25   : > { %v2634_v2 = vsub.f32 %v2622_v50, %v2632_v44  ;;  %v2635_v31 = vmul.f32 %v2633_v38, %v2633_v38 }
 0xd27   : > { %v2637_v4 = vsel %vm759_vm2, %v2635_v31, 0.0  ;;  %v2636_v5 = vmul.f32 %v2634_v2, %v2634_v2 }
 0xd28   : > { %2638 = vadd.xlane.f32.xlu1 %v2637_v4 }
 0xd29   : > { %v2640_v6 = vsel %vm759_vm2, %v2636_v5, 0.0 }
 0xd2a   : > { %2641 = vadd.xlane.f32.xlu0 %v2640_v6 }
 0xdb5   : > { %v2639_v9 = vpop.xlane.xlu1 %2638 }
 0xdb6   : > { %v2643_v10 = vmul.f32 0.03125, %v2639_v9 }
 0xdb7   : > { %v2642_v0 = vpop.xlane.xlu0 %2641 }
 0xdb8   : > { %v2645_v7 = vadd.f32 1e-06, %v2643_v10  ;;  %v2644_v11 = vmul.f32 0.03125, %v2642_v0 }
 0xdba   : > { %3343 = vrsqrt.f32 %v2645_v7  ;;  %v2646_v55 = vadd.f32 1e-06, %v2644_v11 }
 0xdbc   : > { %3345 = vrsqrt.f32 %v2646_v55 }
 0xdc4   : > { %v3344_v56 = vpop.eup %3343 }
 0xdc5   : > { %v2649_v12 = vmul.f32 %v3344_v56, %v2633_v38 }
 0xdc6   : > { %v3346_v58 = vpop.eup %3345 }
 0xdc7   : > { %v2657_v60 = vmul.f32 %v2951_v57, %v2649_v12  ;;  %v2650_v51 = vmul.f32 %v3346_v58, %v2634_v2  ;;  %2672 = sbr.rel (%p2953_p5) target bundleno = 3849 (0xf09), region = 92 }
 0xdc9   : > { %v2665_v48 = vadd.f32 %v2952_v59, %v2657_v60  ;;  %v2658_v61 = vmul.f32 %v2951_v57, %v2650_v51 }
 0xdcb   : > { %2667 = vst.msk [vmem:[#allocation2] sm:$0xff] %vm759_vm2, %v2665_v48  ;;  %v2666_v36 = vadd.f32 %v2952_v59, %v2658_v61  ;;  %v2675_v62 = vsel (!%p2953_p5), %vm759_vm2, %v2665_v48, 0.0 }
 0xdcc   : > { %2676 = vadd.xlane.f32.xlu0 (!%p2953_p5), %v2675_v62 }
 0xdcd   : > { %2668 = vst.msk [vmem:[#allocation2 + $0x8] sm:$0xff] %vm759_vm2, %v2666_v36  ;;  %v2678_v40 = vsel (!%p2953_p5), %vm759_vm2, %v2666_v36, 0.0 }
 0xdd0   : > { %2679 = vadd.xlane.f32.xlu0 %v2678_v40 }
 0xe59   : > { %v2677_v26 = vpop.xlane.xlu0 %2676 }
 0xe5a   : > { %v2681_v21 = vmul.f32 0.03125, %v2677_v26 }
 0xe5c   : > { %v2683_v1 = vsub.f32 %v2665_v48, %v2681_v21 }
 0xe5d   : > { %v2680_v8 = vpop.xlane.xlu0 %2679 }
 0xe5e   : > { %v2682_v15 = vmul.f32 0.03125, %v2680_v8  ;;  %v2685_v16 = vmul.f32 %v2683_v1, %v2683_v1 }
 0xe60   : > { %v2684_v17 = vsub.f32 %v2666_v36, %v2682_v15  ;;  %v2687_v24 = vsel %vm759_vm2, %v2685_v16, 0.0 }
 0xe61   : > { %2688 = vadd.xlane.f32.xlu1 %v2687_v24 }
 0xe62   : > { %v2686_v18 = vmul.f32 %v2684_v17, %v2684_v17 }
 0xe64   : > { %v2690_v20 = vsel %vm759_vm2, %v2686_v18, 0.0 }
 0xe65   : > { %2691 = vadd.xlane.f32.xlu1 %v2690_v20 }
 0xeee   : > { %v2689_v23 = vpop.xlane.xlu1 %2688 }
 0xeef   : > { %v2693_v25 = vmul.f32 0.03125, %v2689_v23 }
 0xef1   : > { %v2695_v29 = vadd.f32 1e-06, %v2693_v25 }
 0xef2   : > { %v2692_v63 = vpop.xlane.xlu1 %2691 }
 0xef3   : > { %3347 = vrsqrt.f32 %v2695_v29  ;;  %v2694_v30 = vmul.f32 0.03125, %v2692_v63 }
 0xef5   : > { %v2696_v33 = vadd.f32 1e-06, %v2694_v30 }
 0xef7   : > { %3349 = vrsqrt.f32 %v2696_v33 }
 0xefd   : > { %v3348_v34 = vpop.eup %3347 }
 0xefe   : > { %v2699_v32 = vmul.f32 %v3348_v34, %v2683_v1 }
 0xf00   : > { %v2707_v37 = vmul.f32 %v2954_v35, %v2699_v32 }
 0xf01   : > { %v3350_v39 = vpop.eup %3349 }
 0xf02   : > { %v2715_v42 = vadd.f32 %v2955_v13, %v2707_v37  ;;  %v2700_v14 = vmul.f32 %v3350_v39, %v2684_v17 }
 0xf04   : > { %2717 = vst.msk [vmem:[#allocation3] sm:$0xff] %vm759_vm2, %v2715_v42  ;;  %v2708_v41 = vmul.f32 %v2954_v35, %v2700_v14 }
 0xf06   : > { %v2716_v3 = vadd.f32 %v2955_v13, %v2708_v41 }
 0xf08   : > { %2718 = vst.msk [vmem:[#allocation3 + $0x8] sm:$0xff] %vm759_vm2, %v2716_v3 }
 0xf09 PF: > { %p3276_p6 = scmp.eq.s32.totalorder %s3487_s22, 1  ;;  %s3393_s19 = smov [#allocation3]  }
 0xf0a   : > { %s2725_s16 = sshll.u32 %s3393_s19, 4  ;;  %s2726_s16 = int_to_ptr.vmem [resolvable:$true] %s2725_s16 }
 0xf0b   : > { %s3351_s21 = scalar_lea.vmem %s2726_s16, 256  ;;  %p3358_p10 = scmp.lt.s32.totalorder %s2726_s16, %s2726_s16 }
 0xf0c   : > { %p3352_p7 = scmp.ne.s32.totalorder %s2726_s16, %s3351_s21  ;;  %p3359_p11 = scmp.lt.s32.totalorder %s3351_s21, %s3351_s21 }
 0xf0e   : > { %p3353_p8 = pnand %p3352_p7, %p3276_p6  ;;  %p3360_p12 = por %p3359_p11, %p3358_p10 }
 0xf10   : > { %p3354_p9 = pneg %p3353_p8 }
 0xf12   : > { %p3361_p13 = pnand %p3360_p12, %p3354_p9 }
 0xf14   : > { %3364 = shalt.err (!%p3361_p13)
}
 0xf15   : > { %s4044_s29 = sld [smem:[#allocation14_spill]] }
 0xf1b   : > { %s3365_s14 = scalar_lea.hbm %s4044_s29, 256 }
 0xf1c   : > { %p3366_p0 = scmp.ne.s32.totalorder %s4044_s29, %s3365_s14  ;;  %p3371_p3 = scmp.lt.u32.totalorder %s3365_s14, %s4044_s29 }
 0xf1e   : > { %p3367_p1 = pnand %p3366_p0, %p3276_p6 }
 0xf20   : > { %p3368_p2 = pneg %p3367_p1 }
 0xf22   : > { %p3373_p4 = pnand %p3371_p3, %p3368_p2 }
 0xf24   : > { %3376 = shalt.err (!%p3373_p4)
}
 0xf25   : > { %s3394_s26 = smov 128   ;;  %s3395_s17 = smov 8  }
 0xf26   : > { %3273 = dma.vmem_to_hbm [thread:$0]  (%p3276_p6), %s2726_s16, 256, %s4044_s29, [#allocation4], %s3394_s26, %s3394_s26, %s3395_s17  }
 0xf27   : > { %3382 = dma.done.wait (%p3276_p6), [#allocation4], 256  }
 0xf28   : > { %3384 = vsyncadd (%p3276_p6), [#allocation4], 4294967040 }
 0xf29 PF: > { %s4045_s25 = sld [smem:[#allocation6_spill]] }
 0xf2f   : > { %s27_s21 = sadd.s32 1, %s4045_s25  }
 0xf30   : > { %p24_p5 = scmp.ge.s32.totalorder %s27_s21, 4  }
 0xf32   :  { %26 = sbr.rel (!%p24_p5) target bundleno = 10 (0xa), region = 152 }
 0xf39   :  { %2741 = vsyncpa [#allocation4], 1 }
 0xf3a   :  { %2743 = vsyncpa [#allocation4 + $0x1], 1 }

</bundles_post_ra>
